<compile_context>
chip_gen: v6e
topology: v6e:2x2x1
jax: 0.10.0
libtpu: 0.0.40
codegen_flags: <defaults>
</compile_context>

<pallas_src>
import functools

import jax
import jax.numpy as jnp
from jax import lax
from jax.experimental import pallas as pl
from jax.experimental.pallas import tpu as pltpu


# ----------------------------- Pallas kernel ------------------------------ #
def _lstm2_kernel(pg1_ref, w_hh1_ref, w_ih2_ref, w_hh2_ref, b2_ref, out_ref,
                  h1_ref, c1_ref, h2_ref, c2_ref, h1buf_ref):
    """Fused 2-layer LSTM recurrence over one time chunk.

    pg1_ref  : (Tc, Bp, 4*Hp)  layer-1 pre-gates (x @ W_ih1 + b1), gate-aligned/padded
    w_hh1_ref: (Hp, 4*Hp)      layer-1 recurrent weights
    w_ih2_ref: (Hp, 4*Hp)      layer-2 input-projection weights (applied to layer-1 h)
    w_hh2_ref: (Hp, 4*Hp)      layer-2 recurrent weights
    b2_ref   : (1, 4*Hp)       layer-2 bias (b_ih + b_hh)
    out_ref  : (Tc, Bp, Hp)    layer-2 hidden states for this chunk (lane-dense store)
    h*/c*    : (Bp, Hp) f32    recurrent state scratch, persists across grid steps
    h1buf_ref: (Tc*Bp, Hp) f32 layer-1 outputs for this chunk (feeds a dense matmul)
    """
    Tc, Bp, G = pg1_ref.shape
    Hp = G // 4

    @pl.when(pl.program_id(0) == 0)
    def _():
        h1_ref[...] = jnp.zeros_like(h1_ref)
        c1_ref[...] = jnp.zeros_like(c1_ref)
        h2_ref[...] = jnp.zeros_like(h2_ref)
        c2_ref[...] = jnp.zeros_like(c2_ref)

    def cell(gates, c_prev):
        # Gate blocks start on 128-lane boundaries (Hp multiple of 128) -> free slices.
        i_g = jax.nn.sigmoid(gates[:, 0 * Hp:1 * Hp])
        f_g = jax.nn.sigmoid(gates[:, 1 * Hp:2 * Hp])
        g_g = jnp.tanh(gates[:, 2 * Hp:3 * Hp])
        o_g = jax.nn.sigmoid(gates[:, 3 * Hp:4 * Hp])
        c_new = f_g * c_prev + i_g * g_g
        h_new = o_g * jnp.tanh(c_new)
        return h_new, c_new

    # Hoist loop-invariant weight loads out of the unrolled time loops.
    w_hh1 = w_hh1_ref[...]
    w_hh2 = w_hh2_ref[...]

    # ---- layer 1: recurrence over the chunk (input matmul already hoisted) ----
    for t in range(Tc):  # fully unrolled; static indices -> static VMEM slices
        gates1 = pg1_ref[t] + jnp.dot(h1_ref[...], w_hh1,
                                      preferred_element_type=jnp.float32)
        h1_new, c1_new = cell(gates1, c1_ref[...])
        h1_ref[...] = h1_new
        c1_ref[...] = c1_new
        h1buf_ref[t * Bp:(t + 1) * Bp, :] = h1_new

    # ---- layer 2 input projection: one dense chunk-level MXU matmul ----
    pg2 = jnp.dot(h1buf_ref[...], w_ih2_ref[...],
                  preferred_element_type=jnp.float32) + b2_ref[...]  # (Tc*Bp, 4*Hp)

    # ---- layer 2: recurrence over the chunk ----
    for t in range(Tc):
        gates2 = pg2[t * Bp:(t + 1) * Bp, :] + jnp.dot(h2_ref[...], w_hh2,
                                                       preferred_element_type=jnp.float32)
        h2_new, c2_new = cell(gates2, c2_ref[...])
        h2_ref[...] = h2_new
        c2_ref[...] = c2_new
        out_ref[t] = h2_new.astype(out_ref.dtype)  # (Bp, Hp): lane-dense, unmasked store


# --------------------------- Parameter handling ---------------------------- #
def init_lstm_params(key, input_size, hidden_size, num_layers=2):
    """Params matching nn.LSTM init U(-1/sqrt(H), 1/sqrt(H)); gate order i,f,g,o."""
    k = float(1.0 / (hidden_size ** 0.5))
    params = []
    for layer in range(num_layers):
        d_in = input_size if layer == 0 else hidden_size
        key, k1, k2, k3, k4 = jax.random.split(key, 5)
        params.append({
            "w_ih": jax.random.uniform(k1, (4 * hidden_size, d_in), jnp.float32, -k, k),
            "w_hh": jax.random.uniform(k2, (4 * hidden_size, hidden_size), jnp.float32, -k, k),
            "b_ih": jax.random.uniform(k3, (4 * hidden_size,), jnp.float32, -k, k),
            "b_hh": jax.random.uniform(k4, (4 * hidden_size,), jnp.float32, -k, k),
        })
    return params


def _round_up(n, m):
    return (n + m - 1) // m * m


def _pad_gate_cols(w_t, H, Hp):
    """(Din, 4H) -> (Din, 4Hp): gate k occupies columns [k*Hp, k*Hp + H), rest zero."""
    D = w_t.shape[0]
    out = jnp.zeros((D, 4 * Hp), w_t.dtype)
    for k in range(4):
        out = out.at[:, k * Hp:k * Hp + H].set(w_t[:, k * H:(k + 1) * H])
    return out


def _pad_bias(b, H, Hp):
    out = jnp.zeros((4 * Hp,), b.dtype)
    for k in range(4):
        out = out.at[k * Hp:k * Hp + H].set(b[k * H:(k + 1) * H])
    return out


def _pad_rows(w, Hp):
    """(H, 4Hp) -> (Hp, 4Hp): zero-pad the input-h rows."""
    return jnp.zeros((Hp, w.shape[1]), w.dtype).at[:w.shape[0], :].set(w)


def prepare_kernel_params(params, hidden_size):
    assert len(params) == 2, "fused kernel implements the module default num_layers=2"
    H = hidden_size
    Hp = _round_up(H, 128)
    p1, p2 = params
    w_ih1_t = _pad_gate_cols(p1["w_ih"].T, H, Hp)                     # (D, 4Hp)
    b1 = _pad_bias(p1["b_ih"] + p1["b_hh"], H, Hp)                    # (4Hp,)
    w_hh1 = _pad_rows(_pad_gate_cols(p1["w_hh"].T, H, Hp), Hp)        # (Hp, 4Hp)
    w_ih2 = _pad_rows(_pad_gate_cols(p2["w_ih"].T, H, Hp), Hp)        # (Hp, 4Hp)
    w_hh2 = _pad_rows(_pad_gate_cols(p2["w_hh"].T, H, Hp), Hp)        # (Hp, 4Hp)
    b2 = _pad_bias(p2["b_ih"] + p2["b_hh"], H, Hp).reshape(1, -1)     # (1, 4Hp)
    return dict(w_ih1_t=w_ih1_t, b1=b1, w_hh1=w_hh1, w_ih2=w_ih2, w_hh2=w_hh2,
                b2=b2, H=H, Hp=Hp)


# ------------------------------ Model wrapper ------------------------------ #
def lstm_forward(params, x_btd, merge_func=lambda y: y, t_chunk=8):
    """Equivalent of LSTM.forward: x (B, T, D_in) -> merge_func((B, T, H))."""
    B, T, D = x_btd.shape
    H = params[0]["w_hh"].shape[1]
    kp = prepare_kernel_params(params, H)
    Hp = kp["Hp"]
    Bp = _round_up(B, 8)
    Tc = min(t_chunk, T)
    Tp = _round_up(T, Tc)

    # Layer-1 pre-gates for ALL timesteps: one dense, fully-utilized matmul, produced
    # directly in time-major (T, B, 4Hp) layout (no separate activation transpose pass).
    pg1 = jnp.einsum("btd,dg->tbg", x_btd, kp["w_ih1_t"],
                     precision=lax.Precision.HIGHEST) + kp["b1"]       # (T, B, 4Hp)
    pg1 = jnp.pad(pg1, ((0, Tp - T), (0, Bp - B), (0, 0)))             # (Tp, Bp, 4Hp)

    out_pad = pl.pallas_call(
        _lstm2_kernel,
        out_shape=jax.ShapeDtypeStruct((Tp, Bp, Hp), x_btd.dtype),
        grid_spec=pltpu.PrefetchScalarGridSpec(
            num_scalar_prefetch=0,
            grid=(Tp // Tc,),
            in_specs=[
                pl.BlockSpec((Tc, Bp, 4 * Hp), lambda c: (c, 0, 0)),   # pre-gates chunk
                pl.BlockSpec((Hp, 4 * Hp), lambda c: (0, 0)),          # W_hh layer 1
                pl.BlockSpec((Hp, 4 * Hp), lambda c: (0, 0)),          # W_ih layer 2
                pl.BlockSpec((Hp, 4 * Hp), lambda c: (0, 0)),          # W_hh layer 2
                pl.BlockSpec((1, 4 * Hp), lambda c: (0, 0)),           # bias layer 2
            ],
            out_specs=pl.BlockSpec((Tc, Bp, Hp), lambda c: (c, 0, 0)),
            scratch_shapes=[
                pltpu.VMEM((Bp, Hp), jnp.float32),        # h1
                pltpu.VMEM((Bp, Hp), jnp.float32),        # c1
                pltpu.VMEM((Bp, Hp), jnp.float32),        # h2
                pltpu.VMEM((Bp, Hp), jnp.float32),        # c2
                pltpu.VMEM((Tc * Bp, Hp), jnp.float32),   # layer-1 h chunk buffer
            ],
        ),
        compiler_params=pltpu.CompilerParams(
            dimension_semantics=("arbitrary",),  # time chunks are a sequential recurrence
        ),
    )(pg1, kp["w_hh1"], kp["w_ih2"], kp["w_hh2"], kp["b2"])

    out = out_pad[:T, :B, :H]                # drop time / batch / lane padding
    out = jnp.transpose(out, (1, 0, 2))      # back to batch-first (B, T, H)
    return merge_func(out)


# --------------------------- Pure-JAX reference ---------------------------- #
def lstm_forward_ref(params, x_btd):
    h = jnp.transpose(x_btd, (1, 0, 2))  # (T, B, D)
    for p in params:
        H = p["w_hh"].shape[1]
        B = h.shape[1]
        w_ih_t = p["w_ih"].T
        w_hh_t = p["w_hh"].T
        b = p["b_ih"] + p["b_hh"]

        def step(carry, x_t, w_ih_t=w_ih_t, w_hh_t=w_hh_t, b=b, H=H):
            h_prev, c_prev = carry
            gates = (jnp.dot(x_t, w_ih_t, precision=lax.Precision.HIGHEST)
                     + jnp.dot(h_prev, w_hh_t, precision=lax.Precision.HIGHEST) + b)
            i_g = jax.nn.sigmoid(gates[:, 0 * H:1 * H])
            f_g = jax.nn.sigmoid(gates[:, 1 * H:2 * H])
            g_g = jnp.tanh(gates[:, 2 * H:3 * H])
            o_g = jax.nn.sigmoid(gates[:, 3 * H:4 * H])
            c_new = f_g * c_prev + i_g * g_g
            h_new = o_g * jnp.tanh(c_new)
            return (h_new, c_new), h_new

        init = (jnp.zeros((B, H), jnp.float32), jnp.zeros((B, H), jnp.float32))
        _, h = lax.scan(step, init, h)
    return jnp.transpose(h, (1, 0, 2))


# ---------------------------------- Main ----------------------------------- #
if __name__ == "__main__":
    B, T, INPUT_SIZE, HIDDEN_SIZE, NUM_LAYERS = 2, 8, 16, 32, 2

    key = jax.random.PRNGKey(0)
    key_x, key_p = jax.random.split(key)
    x = jax.random.normal(key_x, (B, T, INPUT_SIZE), jnp.float32)
    params = init_lstm_params(key_p, INPUT_SIZE, HIDDEN_SIZE, NUM_LAYERS)

    # t_chunk=4 -> grid=(2,), exercising the cross-chunk h/c state carry.
    fwd = jax.jit(functools.partial(lstm_forward, params, t_chunk=4))
    out = jax.block_until_ready(fwd(x))

    ref = lstm_forward_ref(params, x)
    assert out.shape == (B, T, HIDDEN_SIZE), out.shape
    assert jnp.allclose(out, ref, atol=1e-4, rtol=1e-4), "mismatch vs reference"

    print("KERNEL_OK")
</pallas_src>

<mosaic_0001>
module attributes {stable_mosaic.version = 11 : i64} {
  func.func @_lstm2_kernel(%arg0: i32, %arg1: memref<4x8x512xf32, #tpu.memory_space<vmem>>, %arg2: memref<128x512xf32, #tpu.memory_space<vmem>>, %arg3: memref<128x512xf32, #tpu.memory_space<vmem>>, %arg4: memref<128x512xf32, #tpu.memory_space<vmem>>, %arg5: memref<1x512xf32, #tpu.memory_space<vmem>>, %arg6: memref<4x8x128xf32, #tpu.memory_space<vmem>>, %arg7: memref<8x128xf32, #tpu.memory_space<vmem>>, %arg8: memref<8x128xf32, #tpu.memory_space<vmem>>, %arg9: memref<8x128xf32, #tpu.memory_space<vmem>>, %arg10: memref<8x128xf32, #tpu.memory_space<vmem>>, %arg11: memref<32x128xf32, #tpu.memory_space<vmem>>) attributes {dimension_semantics = [#tpu.dimension_semantics<arbitrary>], iteration_bounds = array<i64: 2>, scalar_prefetch = 0 : i64, scratch_operands = 5 : i64, tpu.core_type = #tpu.core_type<tc>, window_params = [{transform_indices = @transform_0, window_bounds = array<i64: 4, 8, 512>}, {pipeline_mode = #tpu.pipeline_mode<synchronous>, transform_indices = @transform_1, window_bounds = array<i64: 128, 512>}, {pipeline_mode = #tpu.pipeline_mode<synchronous>, transform_indices = @transform_2, window_bounds = array<i64: 128, 512>}, {pipeline_mode = #tpu.pipeline_mode<synchronous>, transform_indices = @transform_3, window_bounds = array<i64: 128, 512>}, {pipeline_mode = #tpu.pipeline_mode<synchronous>, transform_indices = @transform_4, window_bounds = array<i64: 1, 512>}, {transform_indices = @transform_5, window_bounds = array<i64: 4, 8, 128>}]} {
    %c0_i32 = arith.constant 0 : i32
    %0 = arith.cmpi eq, %arg0, %c0_i32 : i32
    %1 = arith.extui %0 : i1 to i32
    %c0_i32_0 = arith.constant 0 : i32
    %2 = arith.cmpi ne, %1, %c0_i32_0 : i32
    scf.if %2 {
      %cst_132 = arith.constant 0.000000e+00 : f32
      %287 = vector.broadcast %cst_132 : f32 to vector<8x128xf32>
      %c0_133 = arith.constant 0 : index
      %c0_134 = arith.constant 0 : index
      %288 = vector.load %arg7[%c0_133, %c0_134] : memref<8x128xf32, #tpu.memory_space<vmem>>, vector<8x128xf32>
      tpu.vector_store %arg7[%c0_133, %c0_134], %287 {strides = array<i32>} : memref<8x128xf32, #tpu.memory_space<vmem>>, vector<8x128xf32>,
      %cst_135 = arith.constant 0.000000e+00 : f32
      %289 = vector.broadcast %cst_135 : f32 to vector<8x128xf32>
      %c0_136 = arith.constant 0 : index
      %c0_137 = arith.constant 0 : index
      %290 = vector.load %arg8[%c0_136, %c0_137] : memref<8x128xf32, #tpu.memory_space<vmem>>, vector<8x128xf32>
      tpu.vector_store %arg8[%c0_136, %c0_137], %289 {strides = array<i32>} : memref<8x128xf32, #tpu.memory_space<vmem>>, vector<8x128xf32>,
      %cst_138 = arith.constant 0.000000e+00 : f32
      %291 = vector.broadcast %cst_138 : f32 to vector<8x128xf32>
      %c0_139 = arith.constant 0 : index
      %c0_140 = arith.constant 0 : index
      %292 = vector.load %arg9[%c0_139, %c0_140] : memref<8x128xf32, #tpu.memory_space<vmem>>, vector<8x128xf32>
      tpu.vector_store %arg9[%c0_139, %c0_140], %291 {strides = array<i32>} : memref<8x128xf32, #tpu.memory_space<vmem>>, vector<8x128xf32>,
      %cst_141 = arith.constant 0.000000e+00 : f32
      %293 = vector.broadcast %cst_141 : f32 to vector<8x128xf32>
      %c0_142 = arith.constant 0 : index
      %c0_143 = arith.constant 0 : index
      %294 = vector.load %arg10[%c0_142, %c0_143] : memref<8x128xf32, #tpu.memory_space<vmem>>, vector<8x128xf32>
      tpu.vector_store %arg10[%c0_142, %c0_143], %293 {strides = array<i32>} : memref<8x128xf32, #tpu.memory_space<vmem>>, vector<8x128xf32>,
    } else {
    }
    %c0 = arith.constant 0 : index
    %c0_1 = arith.constant 0 : index
    %3 = vector.load %arg2[%c0, %c0_1] : memref<128x512xf32, #tpu.memory_space<vmem>>, vector<128x512xf32>
    %c0_2 = arith.constant 0 : index
    %c0_3 = arith.constant 0 : index
    %4 = vector.load %arg4[%c0_2, %c0_3] : memref<128x512xf32, #tpu.memory_space<vmem>>, vector<128x512xf32>
    %c0_4 = arith.constant 0 : index
    %c0_5 = arith.constant 0 : index
    %c0_6 = arith.constant 0 : index
    %5 = vector.load %arg1[%c0_4, %c0_5, %c0_6] : memref<4x8x512xf32, #tpu.memory_space<vmem>>, vector<1x8x512xf32>
    %6 = vector.shape_cast %5 : vector<1x8x512xf32> to vector<8x512xf32>
    %c0_7 = arith.constant 0 : index
    %c0_8 = arith.constant 0 : index
    %7 = vector.load %arg7[%c0_7, %c0_8] : memref<8x128xf32, #tpu.memory_space<vmem>>, vector<8x128xf32>
    %cst = arith.constant dense<0.000000e+00> : vector<8x512xf32>
    %8 = tpu.matmul %7, %3, %cst {dimension_numbers = #tpu.dot_dimension_numbers<[1], [0], [0], [1], [0, 0, 1, 1], [], []>} : vector<8x128xf32>, vector<128x512xf32>, vector<8x512xf32> -> vector<8x512xf32>
    %9 = arith.addf %6, %8 : vector<8x512xf32>
    %c0_9 = arith.constant 0 : index
    %c0_10 = arith.constant 0 : index
    %10 = vector.load %arg8[%c0_9, %c0_10] : memref<8x128xf32, #tpu.memory_space<vmem>>, vector<8x128xf32>
    %11 = vector.extract_strided_slice %9 {offsets = [0, 0], sizes = [8, 128], strides = [1, 1]} : vector<8x512xf32> to vector<8x128xf32>
    %12 = arith.negf %11 : vector<8x128xf32>
    %13 = math.exp %12 : vector<8x128xf32>
    %cst_11 = arith.constant 1.000000e+00 : f32
    %14 = vector.broadcast %cst_11 : f32 to vector<8x128xf32>
    %15 = arith.addf %14, %13 : vector<8x128xf32>
    %16 = arith.divf %14, %15 : vector<8x128xf32>
    %17 = vector.extract_strided_slice %9 {offsets = [0, 128], sizes = [8, 128], strides = [1, 1]} : vector<8x512xf32> to vector<8x128xf32>
    %18 = arith.negf %17 : vector<8x128xf32>
    %19 = math.exp %18 : vector<8x128xf32>
    %cst_12 = arith.constant 1.000000e+00 : f32
    %20 = vector.broadcast %cst_12 : f32 to vector<8x128xf32>
    %21 = arith.addf %20, %19 : vector<8x128xf32>
    %22 = arith.divf %20, %21 : vector<8x128xf32>
    %23 = vector.extract_strided_slice %9 {offsets = [0, 256], sizes = [8, 128], strides = [1, 1]} : vector<8x512xf32> to vector<8x128xf32>
    %24 = math.tanh %23 : vector<8x128xf32>
    %25 = vector.extract_strided_slice %9 {offsets = [0, 384], sizes = [8, 128], strides = [1, 1]} : vector<8x512xf32> to vector<8x128xf32>
    %26 = arith.negf %25 : vector<8x128xf32>
    %27 = math.exp %26 : vector<8x128xf32>
    %cst_13 = arith.constant 1.000000e+00 : f32
    %28 = vector.broadcast %cst_13 : f32 to vector<8x128xf32>
    %29 = arith.addf %28, %27 : vector<8x128xf32>
    %30 = arith.divf %28, %29 : vector<8x128xf32>
    %31 = arith.mulf %22, %10 : vector<8x128xf32>
    %32 = arith.mulf %16, %24 : vector<8x128xf32>
    %33 = arith.addf %31, %32 : vector<8x128xf32>
    %34 = math.tanh %33 : vector<8x128xf32>
    %35 = arith.mulf %30, %34 : vector<8x128xf32>
    %c0_14 = arith.constant 0 : index
    %c0_15 = arith.constant 0 : index
    %36 = vector.load %arg7[%c0_14, %c0_15] : memref<8x128xf32, #tpu.memory_space<vmem>>, vector<8x128xf32>
    tpu.vector_store %arg7[%c0_14, %c0_15], %35 {strides = array<i32>} : memref<8x128xf32, #tpu.memory_space<vmem>>, vector<8x128xf32>,
    %c0_16 = arith.constant 0 : index
    %c0_17 = arith.constant 0 : index
    %37 = vector.load %arg8[%c0_16, %c0_17] : memref<8x128xf32, #tpu.memory_space<vmem>>, vector<8x128xf32>
    tpu.vector_store %arg8[%c0_16, %c0_17], %33 {strides = array<i32>} : memref<8x128xf32, #tpu.memory_space<vmem>>, vector<8x128xf32>,
    %c0_18 = arith.constant 0 : index
    %c0_19 = arith.constant 0 : index
    %38 = vector.load %arg11[%c0_18, %c0_19] : memref<32x128xf32, #tpu.memory_space<vmem>>, vector<8x128xf32>
    tpu.vector_store %arg11[%c0_18, %c0_19], %35 {strides = array<i32>} : memref<32x128xf32, #tpu.memory_space<vmem>>, vector<8x128xf32>,
    %c1 = arith.constant 1 : index
    %c0_20 = arith.constant 0 : index
    %c0_21 = arith.constant 0 : index
    %39 = vector.load %arg1[%c1, %c0_20, %c0_21] : memref<4x8x512xf32, #tpu.memory_space<vmem>>, vector<1x8x512xf32>
    %40 = vector.shape_cast %39 : vector<1x8x512xf32> to vector<8x512xf32>
    %c0_22 = arith.constant 0 : index
    %c0_23 = arith.constant 0 : index
    %41 = vector.load %arg7[%c0_22, %c0_23] : memref<8x128xf32, #tpu.memory_space<vmem>>, vector<8x128xf32>
    %cst_24 = arith.constant dense<0.000000e+00> : vector<8x512xf32>
    %42 = tpu.matmul %41, %3, %cst_24 {dimension_numbers = #tpu.dot_dimension_numbers<[1], [0], [0], [1], [0, 0, 1, 1], [], []>} : vector<8x128xf32>, vector<128x512xf32>, vector<8x512xf32> -> vector<8x512xf32>
    %43 = arith.addf %40, %42 : vector<8x512xf32>
    %c0_25 = arith.constant 0 : index
    %c0_26 = arith.constant 0 : index
    %44 = vector.load %arg8[%c0_25, %c0_26] : memref<8x128xf32, #tpu.memory_space<vmem>>, vector<8x128xf32>
    %45 = vector.extract_strided_slice %43 {offsets = [0, 0], sizes = [8, 128], strides = [1, 1]} : vector<8x512xf32> to vector<8x128xf32>
    %46 = arith.negf %45 : vector<8x128xf32>
    %47 = math.exp %46 : vector<8x128xf32>
    %cst_27 = arith.constant 1.000000e+00 : f32
    %48 = vector.broadcast %cst_27 : f32 to vector<8x128xf32>
    %49 = arith.addf %48, %47 : vector<8x128xf32>
    %50 = arith.divf %48, %49 : vector<8x128xf32>
    %51 = vector.extract_strided_slice %43 {offsets = [0, 128], sizes = [8, 128], strides = [1, 1]} : vector<8x512xf32> to vector<8x128xf32>
    %52 = arith.negf %51 : vector<8x128xf32>
    %53 = math.exp %52 : vector<8x128xf32>
    %cst_28 = arith.constant 1.000000e+00 : f32
    %54 = vector.broadcast %cst_28 : f32 to vector<8x128xf32>
    %55 = arith.addf %54, %53 : vector<8x128xf32>
    %56 = arith.divf %54, %55 : vector<8x128xf32>
    %57 = vector.extract_strided_slice %43 {offsets = [0, 256], sizes = [8, 128], strides = [1, 1]} : vector<8x512xf32> to vector<8x128xf32>
    %58 = math.tanh %57 : vector<8x128xf32>
    %59 = vector.extract_strided_slice %43 {offsets = [0, 384], sizes = [8, 128], strides = [1, 1]} : vector<8x512xf32> to vector<8x128xf32>
    %60 = arith.negf %59 : vector<8x128xf32>
    %61 = math.exp %60 : vector<8x128xf32>
    %cst_29 = arith.constant 1.000000e+00 : f32
    %62 = vector.broadcast %cst_29 : f32 to vector<8x128xf32>
    %63 = arith.addf %62, %61 : vector<8x128xf32>
    %64 = arith.divf %62, %63 : vector<8x128xf32>
    %65 = arith.mulf %56, %44 : vector<8x128xf32>
    %66 = arith.mulf %50, %58 : vector<8x128xf32>
    %67 = arith.addf %65, %66 : vector<8x128xf32>
    %68 = math.tanh %67 : vector<8x128xf32>
    %69 = arith.mulf %64, %68 : vector<8x128xf32>
    %c0_30 = arith.constant 0 : index
    %c0_31 = arith.constant 0 : index
    %70 = vector.load %arg7[%c0_30, %c0_31] : memref<8x128xf32, #tpu.memory_space<vmem>>, vector<8x128xf32>
    tpu.vector_store %arg7[%c0_30, %c0_31], %69 {strides = array<i32>} : memref<8x128xf32, #tpu.memory_space<vmem>>, vector<8x128xf32>,
    %c0_32 = arith.constant 0 : index
    %c0_33 = arith.constant 0 : index
    %71 = vector.load %arg8[%c0_32, %c0_33] : memref<8x128xf32, #tpu.memory_space<vmem>>, vector<8x128xf32>
    tpu.vector_store %arg8[%c0_32, %c0_33], %67 {strides = array<i32>} : memref<8x128xf32, #tpu.memory_space<vmem>>, vector<8x128xf32>,
    %c8 = arith.constant 8 : index
    %c0_34 = arith.constant 0 : index
    %72 = vector.load %arg11[%c8, %c0_34] : memref<32x128xf32, #tpu.memory_space<vmem>>, vector<8x128xf32>
    tpu.vector_store %arg11[%c8, %c0_34], %69 {strides = array<i32>} : memref<32x128xf32, #tpu.memory_space<vmem>>, vector<8x128xf32>,
    %c2 = arith.constant 2 : index
    %c0_35 = arith.constant 0 : index
    %c0_36 = arith.constant 0 : index
    %73 = vector.load %arg1[%c2, %c0_35, %c0_36] : memref<4x8x512xf32, #tpu.memory_space<vmem>>, vector<1x8x512xf32>
    %74 = vector.shape_cast %73 : vector<1x8x512xf32> to vector<8x512xf32>
    %c0_37 = arith.constant 0 : index
    %c0_38 = arith.constant 0 : index
    %75 = vector.load %arg7[%c0_37, %c0_38] : memref<8x128xf32, #tpu.memory_space<vmem>>, vector<8x128xf32>
    %cst_39 = arith.constant dense<0.000000e+00> : vector<8x512xf32>
    %76 = tpu.matmul %75, %3, %cst_39 {dimension_numbers = #tpu.dot_dimension_numbers<[1], [0], [0], [1], [0, 0, 1, 1], [], []>} : vector<8x128xf32>, vector<128x512xf32>, vector<8x512xf32> -> vector<8x512xf32>
    %77 = arith.addf %74, %76 : vector<8x512xf32>
    %c0_40 = arith.constant 0 : index
    %c0_41 = arith.constant 0 : index
    %78 = vector.load %arg8[%c0_40, %c0_41] : memref<8x128xf32, #tpu.memory_space<vmem>>, vector<8x128xf32>
    %79 = vector.extract_strided_slice %77 {offsets = [0, 0], sizes = [8, 128], strides = [1, 1]} : vector<8x512xf32> to vector<8x128xf32>
    %80 = arith.negf %79 : vector<8x128xf32>
    %81 = math.exp %80 : vector<8x128xf32>
    %cst_42 = arith.constant 1.000000e+00 : f32
    %82 = vector.broadcast %cst_42 : f32 to vector<8x128xf32>
    %83 = arith.addf %82, %81 : vector<8x128xf32>
    %84 = arith.divf %82, %83 : vector<8x128xf32>
    %85 = vector.extract_strided_slice %77 {offsets = [0, 128], sizes = [8, 128], strides = [1, 1]} : vector<8x512xf32> to vector<8x128xf32>
    %86 = arith.negf %85 : vector<8x128xf32>
    %87 = math.exp %86 : vector<8x128xf32>
    %cst_43 = arith.constant 1.000000e+00 : f32
    %88 = vector.broadcast %cst_43 : f32 to vector<8x128xf32>
    %89 = arith.addf %88, %87 : vector<8x128xf32>
    %90 = arith.divf %88, %89 : vector<8x128xf32>
    %91 = vector.extract_strided_slice %77 {offsets = [0, 256], sizes = [8, 128], strides = [1, 1]} : vector<8x512xf32> to vector<8x128xf32>
    %92 = math.tanh %91 : vector<8x128xf32>
    %93 = vector.extract_strided_slice %77 {offsets = [0, 384], sizes = [8, 128], strides = [1, 1]} : vector<8x512xf32> to vector<8x128xf32>
    %94 = arith.negf %93 : vector<8x128xf32>
    %95 = math.exp %94 : vector<8x128xf32>
    %cst_44 = arith.constant 1.000000e+00 : f32
    %96 = vector.broadcast %cst_44 : f32 to vector<8x128xf32>
    %97 = arith.addf %96, %95 : vector<8x128xf32>
    %98 = arith.divf %96, %97 : vector<8x128xf32>
    %99 = arith.mulf %90, %78 : vector<8x128xf32>
    %100 = arith.mulf %84, %92 : vector<8x128xf32>
    %101 = arith.addf %99, %100 : vector<8x128xf32>
    %102 = math.tanh %101 : vector<8x128xf32>
    %103 = arith.mulf %98, %102 : vector<8x128xf32>
    %c0_45 = arith.constant 0 : index
    %c0_46 = arith.constant 0 : index
    %104 = vector.load %arg7[%c0_45, %c0_46] : memref<8x128xf32, #tpu.memory_space<vmem>>, vector<8x128xf32>
    tpu.vector_store %arg7[%c0_45, %c0_46], %103 {strides = array<i32>} : memref<8x128xf32, #tpu.memory_space<vmem>>, vector<8x128xf32>,
    %c0_47 = arith.constant 0 : index
    %c0_48 = arith.constant 0 : index
    %105 = vector.load %arg8[%c0_47, %c0_48] : memref<8x128xf32, #tpu.memory_space<vmem>>, vector<8x128xf32>
    tpu.vector_store %arg8[%c0_47, %c0_48], %101 {strides = array<i32>} : memref<8x128xf32, #tpu.memory_space<vmem>>, vector<8x128xf32>,
    %c16 = arith.constant 16 : index
    %c0_49 = arith.constant 0 : index
    %106 = vector.load %arg11[%c16, %c0_49] : memref<32x128xf32, #tpu.memory_space<vmem>>, vector<8x128xf32>
    tpu.vector_store %arg11[%c16, %c0_49], %103 {strides = array<i32>} : memref<32x128xf32, #tpu.memory_space<vmem>>, vector<8x128xf32>,
    %c3 = arith.constant 3 : index
    %c0_50 = arith.constant 0 : index
    %c0_51 = arith.constant 0 : index
    %107 = vector.load %arg1[%c3, %c0_50, %c0_51] : memref<4x8x512xf32, #tpu.memory_space<vmem>>, vector<1x8x512xf32>
    %108 = vector.shape_cast %107 : vector<1x8x512xf32> to vector<8x512xf32>
    %c0_52 = arith.constant 0 : index
    %c0_53 = arith.constant 0 : index
    %109 = vector.load %arg7[%c0_52, %c0_53] : memref<8x128xf32, #tpu.memory_space<vmem>>, vector<8x128xf32>
    %cst_54 = arith.constant dense<0.000000e+00> : vector<8x512xf32>
    %110 = tpu.matmul %109, %3, %cst_54 {dimension_numbers = #tpu.dot_dimension_numbers<[1], [0], [0], [1], [0, 0, 1, 1], [], []>} : vector<8x128xf32>, vector<128x512xf32>, vector<8x512xf32> -> vector<8x512xf32>
    %111 = arith.addf %108, %110 : vector<8x512xf32>
    %c0_55 = arith.constant 0 : index
    %c0_56 = arith.constant 0 : index
    %112 = vector.load %arg8[%c0_55, %c0_56] : memref<8x128xf32, #tpu.memory_space<vmem>>, vector<8x128xf32>
    %113 = vector.extract_strided_slice %111 {offsets = [0, 0], sizes = [8, 128], strides = [1, 1]} : vector<8x512xf32> to vector<8x128xf32>
    %114 = arith.negf %113 : vector<8x128xf32>
    %115 = math.exp %114 : vector<8x128xf32>
    %cst_57 = arith.constant 1.000000e+00 : f32
    %116 = vector.broadcast %cst_57 : f32 to vector<8x128xf32>
    %117 = arith.addf %116, %115 : vector<8x128xf32>
    %118 = arith.divf %116, %117 : vector<8x128xf32>
    %119 = vector.extract_strided_slice %111 {offsets = [0, 128], sizes = [8, 128], strides = [1, 1]} : vector<8x512xf32> to vector<8x128xf32>
    %120 = arith.negf %119 : vector<8x128xf32>
    %121 = math.exp %120 : vector<8x128xf32>
    %cst_58 = arith.constant 1.000000e+00 : f32
    %122 = vector.broadcast %cst_58 : f32 to vector<8x128xf32>
    %123 = arith.addf %122, %121 : vector<8x128xf32>
    %124 = arith.divf %122, %123 : vector<8x128xf32>
    %125 = vector.extract_strided_slice %111 {offsets = [0, 256], sizes = [8, 128], strides = [1, 1]} : vector<8x512xf32> to vector<8x128xf32>
    %126 = math.tanh %125 : vector<8x128xf32>
    %127 = vector.extract_strided_slice %111 {offsets = [0, 384], sizes = [8, 128], strides = [1, 1]} : vector<8x512xf32> to vector<8x128xf32>
    %128 = arith.negf %127 : vector<8x128xf32>
    %129 = math.exp %128 : vector<8x128xf32>
    %cst_59 = arith.constant 1.000000e+00 : f32
    %130 = vector.broadcast %cst_59 : f32 to vector<8x128xf32>
    %131 = arith.addf %130, %129 : vector<8x128xf32>
    %132 = arith.divf %130, %131 : vector<8x128xf32>
    %133 = arith.mulf %124, %112 : vector<8x128xf32>
    %134 = arith.mulf %118, %126 : vector<8x128xf32>
    %135 = arith.addf %133, %134 : vector<8x128xf32>
    %136 = math.tanh %135 : vector<8x128xf32>
    %137 = arith.mulf %132, %136 : vector<8x128xf32>
    %c0_60 = arith.constant 0 : index
    %c0_61 = arith.constant 0 : index
    %138 = vector.load %arg7[%c0_60, %c0_61] : memref<8x128xf32, #tpu.memory_space<vmem>>, vector<8x128xf32>
    tpu.vector_store %arg7[%c0_60, %c0_61], %137 {strides = array<i32>} : memref<8x128xf32, #tpu.memory_space<vmem>>, vector<8x128xf32>,
    %c0_62 = arith.constant 0 : index
    %c0_63 = arith.constant 0 : index
    %139 = vector.load %arg8[%c0_62, %c0_63] : memref<8x128xf32, #tpu.memory_space<vmem>>, vector<8x128xf32>
    tpu.vector_store %arg8[%c0_62, %c0_63], %135 {strides = array<i32>} : memref<8x128xf32, #tpu.memory_space<vmem>>, vector<8x128xf32>,
    %c24 = arith.constant 24 : index
    %c0_64 = arith.constant 0 : index
    %140 = vector.load %arg11[%c24, %c0_64] : memref<32x128xf32, #tpu.memory_space<vmem>>, vector<8x128xf32>
    tpu.vector_store %arg11[%c24, %c0_64], %137 {strides = array<i32>} : memref<32x128xf32, #tpu.memory_space<vmem>>, vector<8x128xf32>,
    %c0_65 = arith.constant 0 : index
    %c0_66 = arith.constant 0 : index
    %141 = vector.load %arg11[%c0_65, %c0_66] : memref<32x128xf32, #tpu.memory_space<vmem>>, vector<32x128xf32>
    %c0_67 = arith.constant 0 : index
    %c0_68 = arith.constant 0 : index
    %142 = vector.load %arg3[%c0_67, %c0_68] : memref<128x512xf32, #tpu.memory_space<vmem>>, vector<128x512xf32>
    %cst_69 = arith.constant dense<0.000000e+00> : vector<32x512xf32>
    %143 = tpu.matmul %141, %142, %cst_69 {dimension_numbers = #tpu.dot_dimension_numbers<[1], [0], [0], [1], [0, 0, 1, 1], [], []>} : vector<32x128xf32>, vector<128x512xf32>, vector<32x512xf32> -> vector<32x512xf32>
    %c0_70 = arith.constant 0 : index
    %c0_71 = arith.constant 0 : index
    %144 = vector.load %arg5[%c0_70, %c0_71] : memref<1x512xf32, #tpu.memory_space<vmem>>, vector<1x512xf32>
    %145 = vector.broadcast %144 : vector<1x512xf32> to vector<32x512xf32>
    %146 = arith.addf %143, %145 : vector<32x512xf32>
    %147 = vector.extract_strided_slice %146 {offsets = [0, 0], sizes = [8, 512], strides = [1, 1]} : vector<32x512xf32> to vector<8x512xf32>
    %c0_72 = arith.constant 0 : index
    %c0_73 = arith.constant 0 : index
    %148 = vector.load %arg9[%c0_72, %c0_73] : memref<8x128xf32, #tpu.memory_space<vmem>>, vector<8x128xf32>
    %cst_74 = arith.constant dense<0.000000e+00> : vector<8x512xf32>
    %149 = tpu.matmul %148, %4, %cst_74 {dimension_numbers = #tpu.dot_dimension_numbers<[1], [0], [0], [1], [0, 0, 1, 1], [], []>} : vector<8x128xf32>, vector<128x512xf32>, vector<8x512xf32> -> vector<8x512xf32>
    %150 = arith.addf %147, %149 : vector<8x512xf32>
    %c0_75 = arith.constant 0 : index
    %c0_76 = arith.constant 0 : index
    %151 = vector.load %arg10[%c0_75, %c0_76] : memref<8x128xf32, #tpu.memory_space<vmem>>, vector<8x128xf32>
    %152 = vector.extract_strided_slice %150 {offsets = [0, 0], sizes = [8, 128], strides = [1, 1]} : vector<8x512xf32> to vector<8x128xf32>
    %153 = arith.negf %152 : vector<8x128xf32>
    %154 = math.exp %153 : vector<8x128xf32>
    %cst_77 = arith.constant 1.000000e+00 : f32
    %155 = vector.broadcast %cst_77 : f32 to vector<8x128xf32>
    %156 = arith.addf %155, %154 : vector<8x128xf32>
    %157 = arith.divf %155, %156 : vector<8x128xf32>
    %158 = vector.extract_strided_slice %150 {offsets = [0, 128], sizes = [8, 128], strides = [1, 1]} : vector<8x512xf32> to vector<8x128xf32>
    %159 = arith.negf %158 : vector<8x128xf32>
    %160 = math.exp %159 : vector<8x128xf32>
    %cst_78 = arith.constant 1.000000e+00 : f32
    %161 = vector.broadcast %cst_78 : f32 to vector<8x128xf32>
    %162 = arith.addf %161, %160 : vector<8x128xf32>
    %163 = arith.divf %161, %162 : vector<8x128xf32>
    %164 = vector.extract_strided_slice %150 {offsets = [0, 256], sizes = [8, 128], strides = [1, 1]} : vector<8x512xf32> to vector<8x128xf32>
    %165 = math.tanh %164 : vector<8x128xf32>
    %166 = vector.extract_strided_slice %150 {offsets = [0, 384], sizes = [8, 128], strides = [1, 1]} : vector<8x512xf32> to vector<8x128xf32>
    %167 = arith.negf %166 : vector<8x128xf32>
    %168 = math.exp %167 : vector<8x128xf32>
    %cst_79 = arith.constant 1.000000e+00 : f32
    %169 = vector.broadcast %cst_79 : f32 to vector<8x128xf32>
    %170 = arith.addf %169, %168 : vector<8x128xf32>
    %171 = arith.divf %169, %170 : vector<8x128xf32>
    %172 = arith.mulf %163, %151 : vector<8x128xf32>
    %173 = arith.mulf %157, %165 : vector<8x128xf32>
    %174 = arith.addf %172, %173 : vector<8x128xf32>
    %175 = math.tanh %174 : vector<8x128xf32>
    %176 = arith.mulf %171, %175 : vector<8x128xf32>
    %c0_80 = arith.constant 0 : index
    %c0_81 = arith.constant 0 : index
    %177 = vector.load %arg9[%c0_80, %c0_81] : memref<8x128xf32, #tpu.memory_space<vmem>>, vector<8x128xf32>
    tpu.vector_store %arg9[%c0_80, %c0_81], %176 {strides = array<i32>} : memref<8x128xf32, #tpu.memory_space<vmem>>, vector<8x128xf32>,
    %c0_82 = arith.constant 0 : index
    %c0_83 = arith.constant 0 : index
    %178 = vector.load %arg10[%c0_82, %c0_83] : memref<8x128xf32, #tpu.memory_space<vmem>>, vector<8x128xf32>
    tpu.vector_store %arg10[%c0_82, %c0_83], %174 {strides = array<i32>} : memref<8x128xf32, #tpu.memory_space<vmem>>, vector<8x128xf32>,
    %c0_84 = arith.constant 0 : index
    %c0_85 = arith.constant 0 : index
    %c0_86 = arith.constant 0 : index
    %179 = vector.load %arg6[%c0_84, %c0_85, %c0_86] : memref<4x8x128xf32, #tpu.memory_space<vmem>>, vector<1x8x128xf32>
    %180 = vector.shape_cast %179 : vector<1x8x128xf32> to vector<8x128xf32>
    %181 = vector.shape_cast %176 : vector<8x128xf32> to vector<1x8x128xf32>
    tpu.vector_store %arg6[%c0_84, %c0_85, %c0_86], %181 {strides = array<i32>} : memref<4x8x128xf32, #tpu.memory_space<vmem>>, vector<1x8x128xf32>,
    %182 = vector.extract_strided_slice %146 {offsets = [8, 0], sizes = [8, 512], strides = [1, 1]} : vector<32x512xf32> to vector<8x512xf32>
    %c0_87 = arith.constant 0 : index
    %c0_88 = arith.constant 0 : index
    %183 = vector.load %arg9[%c0_87, %c0_88] : memref<8x128xf32, #tpu.memory_space<vmem>>, vector<8x128xf32>
    %cst_89 = arith.constant dense<0.000000e+00> : vector<8x512xf32>
    %184 = tpu.matmul %183, %4, %cst_89 {dimension_numbers = #tpu.dot_dimension_numbers<[1], [0], [0], [1], [0, 0, 1, 1], [], []>} : vector<8x128xf32>, vector<128x512xf32>, vector<8x512xf32> -> vector<8x512xf32>
    %185 = arith.addf %182, %184 : vector<8x512xf32>
    %c0_90 = arith.constant 0 : index
    %c0_91 = arith.constant 0 : index
    %186 = vector.load %arg10[%c0_90, %c0_91] : memref<8x128xf32, #tpu.memory_space<vmem>>, vector<8x128xf32>
    %187 = vector.extract_strided_slice %185 {offsets = [0, 0], sizes = [8, 128], strides = [1, 1]} : vector<8x512xf32> to vector<8x128xf32>
    %188 = arith.negf %187 : vector<8x128xf32>
    %189 = math.exp %188 : vector<8x128xf32>
    %cst_92 = arith.constant 1.000000e+00 : f32
    %190 = vector.broadcast %cst_92 : f32 to vector<8x128xf32>
    %191 = arith.addf %190, %189 : vector<8x128xf32>
    %192 = arith.divf %190, %191 : vector<8x128xf32>
    %193 = vector.extract_strided_slice %185 {offsets = [0, 128], sizes = [8, 128], strides = [1, 1]} : vector<8x512xf32> to vector<8x128xf32>
    %194 = arith.negf %193 : vector<8x128xf32>
    %195 = math.exp %194 : vector<8x128xf32>
    %cst_93 = arith.constant 1.000000e+00 : f32
    %196 = vector.broadcast %cst_93 : f32 to vector<8x128xf32>
    %197 = arith.addf %196, %195 : vector<8x128xf32>
    %198 = arith.divf %196, %197 : vector<8x128xf32>
    %199 = vector.extract_strided_slice %185 {offsets = [0, 256], sizes = [8, 128], strides = [1, 1]} : vector<8x512xf32> to vector<8x128xf32>
    %200 = math.tanh %199 : vector<8x128xf32>
    %201 = vector.extract_strided_slice %185 {offsets = [0, 384], sizes = [8, 128], strides = [1, 1]} : vector<8x512xf32> to vector<8x128xf32>
    %202 = arith.negf %201 : vector<8x128xf32>
    %203 = math.exp %202 : vector<8x128xf32>
    %cst_94 = arith.constant 1.000000e+00 : f32
    %204 = vector.broadcast %cst_94 : f32 to vector<8x128xf32>
    %205 = arith.addf %204, %203 : vector<8x128xf32>
    %206 = arith.divf %204, %205 : vector<8x128xf32>
    %207 = arith.mulf %198, %186 : vector<8x128xf32>
    %208 = arith.mulf %192, %200 : vector<8x128xf32>
    %209 = arith.addf %207, %208 : vector<8x128xf32>
    %210 = math.tanh %209 : vector<8x128xf32>
    %211 = arith.mulf %206, %210 : vector<8x128xf32>
    %c0_95 = arith.constant 0 : index
    %c0_96 = arith.constant 0 : index
    %212 = vector.load %arg9[%c0_95, %c0_96] : memref<8x128xf32, #tpu.memory_space<vmem>>, vector<8x128xf32>
    tpu.vector_store %arg9[%c0_95, %c0_96], %211 {strides = array<i32>} : memref<8x128xf32, #tpu.memory_space<vmem>>, vector<8x128xf32>,
    %c0_97 = arith.constant 0 : index
    %c0_98 = arith.constant 0 : index
    %213 = vector.load %arg10[%c0_97, %c0_98] : memref<8x128xf32, #tpu.memory_space<vmem>>, vector<8x128xf32>
    tpu.vector_store %arg10[%c0_97, %c0_98], %209 {strides = array<i32>} : memref<8x128xf32, #tpu.memory_space<vmem>>, vector<8x128xf32>,
    %c1_99 = arith.constant 1 : index
    %c0_100 = arith.constant 0 : index
    %c0_101 = arith.constant 0 : index
    %214 = vector.load %arg6[%c1_99, %c0_100, %c0_101] : memref<4x8x128xf32, #tpu.memory_space<vmem>>, vector<1x8x128xf32>
    %215 = vector.shape_cast %214 : vector<1x8x128xf32> to vector<8x128xf32>
    %216 = vector.shape_cast %211 : vector<8x128xf32> to vector<1x8x128xf32>
    tpu.vector_store %arg6[%c1_99, %c0_100, %c0_101], %216 {strides = array<i32>} : memref<4x8x128xf32, #tpu.memory_space<vmem>>, vector<1x8x128xf32>,
    %217 = vector.extract_strided_slice %146 {offsets = [16, 0], sizes = [8, 512], strides = [1, 1]} : vector<32x512xf32> to vector<8x512xf32>
    %c0_102 = arith.constant 0 : index
    %c0_103 = arith.constant 0 : index
    %218 = vector.load %arg9[%c0_102, %c0_103] : memref<8x128xf32, #tpu.memory_space<vmem>>, vector<8x128xf32>
    %cst_104 = arith.constant dense<0.000000e+00> : vector<8x512xf32>
    %219 = tpu.matmul %218, %4, %cst_104 {dimension_numbers = #tpu.dot_dimension_numbers<[1], [0], [0], [1], [0, 0, 1, 1], [], []>} : vector<8x128xf32>, vector<128x512xf32>, vector<8x512xf32> -> vector<8x512xf32>
    %220 = arith.addf %217, %219 : vector<8x512xf32>
    %c0_105 = arith.constant 0 : index
    %c0_106 = arith.constant 0 : index
    %221 = vector.load %arg10[%c0_105, %c0_106] : memref<8x128xf32, #tpu.memory_space<vmem>>, vector<8x128xf32>
    %222 = vector.extract_strided_slice %220 {offsets = [0, 0], sizes = [8, 128], strides = [1, 1]} : vector<8x512xf32> to vector<8x128xf32>
    %223 = arith.negf %222 : vector<8x128xf32>
    %224 = math.exp %223 : vector<8x128xf32>
    %cst_107 = arith.constant 1.000000e+00 : f32
    %225 = vector.broadcast %cst_107 : f32 to vector<8x128xf32>
    %226 = arith.addf %225, %224 : vector<8x128xf32>
    %227 = arith.divf %225, %226 : vector<8x128xf32>
    %228 = vector.extract_strided_slice %220 {offsets = [0, 128], sizes = [8, 128], strides = [1, 1]} : vector<8x512xf32> to vector<8x128xf32>
    %229 = arith.negf %228 : vector<8x128xf32>
    %230 = math.exp %229 : vector<8x128xf32>
    %cst_108 = arith.constant 1.000000e+00 : f32
    %231 = vector.broadcast %cst_108 : f32 to vector<8x128xf32>
    %232 = arith.addf %231, %230 : vector<8x128xf32>
    %233 = arith.divf %231, %232 : vector<8x128xf32>
    %234 = vector.extract_strided_slice %220 {offsets = [0, 256], sizes = [8, 128], strides = [1, 1]} : vector<8x512xf32> to vector<8x128xf32>
    %235 = math.tanh %234 : vector<8x128xf32>
    %236 = vector.extract_strided_slice %220 {offsets = [0, 384], sizes = [8, 128], strides = [1, 1]} : vector<8x512xf32> to vector<8x128xf32>
    %237 = arith.negf %236 : vector<8x128xf32>
    %238 = math.exp %237 : vector<8x128xf32>
    %cst_109 = arith.constant 1.000000e+00 : f32
    %239 = vector.broadcast %cst_109 : f32 to vector<8x128xf32>
    %240 = arith.addf %239, %238 : vector<8x128xf32>
    %241 = arith.divf %239, %240 : vector<8x128xf32>
    %242 = arith.mulf %233, %221 : vector<8x128xf32>
    %243 = arith.mulf %227, %235 : vector<8x128xf32>
    %244 = arith.addf %242, %243 : vector<8x128xf32>
    %245 = math.tanh %244 : vector<8x128xf32>
    %246 = arith.mulf %241, %245 : vector<8x128xf32>
    %c0_110 = arith.constant 0 : index
    %c0_111 = arith.constant 0 : index
    %247 = vector.load %arg9[%c0_110, %c0_111] : memref<8x128xf32, #tpu.memory_space<vmem>>, vector<8x128xf32>
    tpu.vector_store %arg9[%c0_110, %c0_111], %246 {strides = array<i32>} : memref<8x128xf32, #tpu.memory_space<vmem>>, vector<8x128xf32>,
    %c0_112 = arith.constant 0 : index
    %c0_113 = arith.constant 0 : index
    %248 = vector.load %arg10[%c0_112, %c0_113] : memref<8x128xf32, #tpu.memory_space<vmem>>, vector<8x128xf32>
    tpu.vector_store %arg10[%c0_112, %c0_113], %244 {strides = array<i32>} : memref<8x128xf32, #tpu.memory_space<vmem>>, vector<8x128xf32>,
    %c2_114 = arith.constant 2 : index
    %c0_115 = arith.constant 0 : index
    %c0_116 = arith.constant 0 : index
    %249 = vector.load %arg6[%c2_114, %c0_115, %c0_116] : memref<4x8x128xf32, #tpu.memory_space<vmem>>, vector<1x8x128xf32>
    %250 = vector.shape_cast %249 : vector<1x8x128xf32> to vector<8x128xf32>
    %251 = vector.shape_cast %246 : vector<8x128xf32> to vector<1x8x128xf32>
    tpu.vector_store %arg6[%c2_114, %c0_115, %c0_116], %251 {strides = array<i32>} : memref<4x8x128xf32, #tpu.memory_space<vmem>>, vector<1x8x128xf32>,
    %252 = vector.extract_strided_slice %146 {offsets = [24, 0], sizes = [8, 512], strides = [1, 1]} : vector<32x512xf32> to vector<8x512xf32>
    %c0_117 = arith.constant 0 : index
    %c0_118 = arith.constant 0 : index
    %253 = vector.load %arg9[%c0_117, %c0_118] : memref<8x128xf32, #tpu.memory_space<vmem>>, vector<8x128xf32>
    %cst_119 = arith.constant dense<0.000000e+00> : vector<8x512xf32>
    %254 = tpu.matmul %253, %4, %cst_119 {dimension_numbers = #tpu.dot_dimension_numbers<[1], [0], [0], [1], [0, 0, 1, 1], [], []>} : vector<8x128xf32>, vector<128x512xf32>, vector<8x512xf32> -> vector<8x512xf32>
    %255 = arith.addf %252, %254 : vector<8x512xf32>
    %c0_120 = arith.constant 0 : index
    %c0_121 = arith.constant 0 : index
    %256 = vector.load %arg10[%c0_120, %c0_121] : memref<8x128xf32, #tpu.memory_space<vmem>>, vector<8x128xf32>
    %257 = vector.extract_strided_slice %255 {offsets = [0, 0], sizes = [8, 128], strides = [1, 1]} : vector<8x512xf32> to vector<8x128xf32>
    %258 = arith.negf %257 : vector<8x128xf32>
    %259 = math.exp %258 : vector<8x128xf32>
    %cst_122 = arith.constant 1.000000e+00 : f32
    %260 = vector.broadcast %cst_122 : f32 to vector<8x128xf32>
    %261 = arith.addf %260, %259 : vector<8x128xf32>
    %262 = arith.divf %260, %261 : vector<8x128xf32>
    %263 = vector.extract_strided_slice %255 {offsets = [0, 128], sizes = [8, 128], strides = [1, 1]} : vector<8x512xf32> to vector<8x128xf32>
    %264 = arith.negf %263 : vector<8x128xf32>
    %265 = math.exp %264 : vector<8x128xf32>
    %cst_123 = arith.constant 1.000000e+00 : f32
    %266 = vector.broadcast %cst_123 : f32 to vector<8x128xf32>
    %267 = arith.addf %266, %265 : vector<8x128xf32>
    %268 = arith.divf %266, %267 : vector<8x128xf32>
    %269 = vector.extract_strided_slice %255 {offsets = [0, 256], sizes = [8, 128], strides = [1, 1]} : vector<8x512xf32> to vector<8x128xf32>
    %270 = math.tanh %269 : vector<8x128xf32>
    %271 = vector.extract_strided_slice %255 {offsets = [0, 384], sizes = [8, 128], strides = [1, 1]} : vector<8x512xf32> to vector<8x128xf32>
    %272 = arith.negf %271 : vector<8x128xf32>
    %273 = math.exp %272 : vector<8x128xf32>
    %cst_124 = arith.constant 1.000000e+00 : f32
    %274 = vector.broadcast %cst_124 : f32 to vector<8x128xf32>
    %275 = arith.addf %274, %273 : vector<8x128xf32>
    %276 = arith.divf %274, %275 : vector<8x128xf32>
    %277 = arith.mulf %268, %256 : vector<8x128xf32>
    %278 = arith.mulf %262, %270 : vector<8x128xf32>
    %279 = arith.addf %277, %278 : vector<8x128xf32>
    %280 = math.tanh %279 : vector<8x128xf32>
    %281 = arith.mulf %276, %280 : vector<8x128xf32>
    %c0_125 = arith.constant 0 : index
    %c0_126 = arith.constant 0 : index
    %282 = vector.load %arg9[%c0_125, %c0_126] : memref<8x128xf32, #tpu.memory_space<vmem>>, vector<8x128xf32>
    tpu.vector_store %arg9[%c0_125, %c0_126], %281 {strides = array<i32>} : memref<8x128xf32, #tpu.memory_space<vmem>>, vector<8x128xf32>,
    %c0_127 = arith.constant 0 : index
    %c0_128 = arith.constant 0 : index
    %283 = vector.load %arg10[%c0_127, %c0_128] : memref<8x128xf32, #tpu.memory_space<vmem>>, vector<8x128xf32>
    tpu.vector_store %arg10[%c0_127, %c0_128], %279 {strides = array<i32>} : memref<8x128xf32, #tpu.memory_space<vmem>>, vector<8x128xf32>,
    %c3_129 = arith.constant 3 : index
    %c0_130 = arith.constant 0 : index
    %c0_131 = arith.constant 0 : index
    %284 = vector.load %arg6[%c3_129, %c0_130, %c0_131] : memref<4x8x128xf32, #tpu.memory_space<vmem>>, vector<1x8x128xf32>
    %285 = vector.shape_cast %284 : vector<1x8x128xf32> to vector<8x128xf32>
    %286 = vector.shape_cast %281 : vector<8x128xf32> to vector<1x8x128xf32>
    tpu.vector_store %arg6[%c3_129, %c0_130, %c0_131], %286 {strides = array<i32>} : memref<4x8x128xf32, #tpu.memory_space<vmem>>, vector<1x8x128xf32>,
    return
  }
  func.func @transform_0(%arg0: i32) -> (i32, i32, i32) {
    %c0_i32 = arith.constant 0 : i32
    %c0_i32_0 = arith.constant 0 : i32
    %c0_i32_1 = arith.constant 0 : i32
    return %arg0, %c0_i32, %c0_i32_0 : i32, i32, i32
  }
  func.func @transform_1(%arg0: i32) -> (i32, i32) {
    %c0_i32 = arith.constant 0 : i32
    %c0_i32_0 = arith.constant 0 : i32
    %c0_i32_1 = arith.constant 0 : i32
    return %c0_i32, %c0_i32_0 : i32, i32
  }
  func.func @transform_2(%arg0: i32) -> (i32, i32) {
    %c0_i32 = arith.constant 0 : i32
    %c0_i32_0 = arith.constant 0 : i32
    %c0_i32_1 = arith.constant 0 : i32
    return %c0_i32, %c0_i32_0 : i32, i32
  }
  func.func @transform_3(%arg0: i32) -> (i32, i32) {
    %c0_i32 = arith.constant 0 : i32
    %c0_i32_0 = arith.constant 0 : i32
    %c0_i32_1 = arith.constant 0 : i32
    return %c0_i32, %c0_i32_0 : i32, i32
  }
  func.func @transform_4(%arg0: i32) -> (i32, i32) {
    %c0_i32 = arith.constant 0 : i32
    %c0_i32_0 = arith.constant 0 : i32
    %c0_i32_1 = arith.constant 0 : i32
    return %c0_i32, %c0_i32_0 : i32, i32
  }
  func.func @transform_5(%arg0: i32) -> (i32, i32, i32) {
    %c0_i32 = arith.constant 0 : i32
    %c0_i32_0 = arith.constant 0 : i32
    %c0_i32_1 = arith.constant 0 : i32
    return %arg0, %c0_i32, %c0_i32_0 : i32, i32, i32
  }
}

</mosaic_0001>

<bundles_post_ra>
// kernel: lstm_forward.1
= control target key start
LH: loop header
LB: loop body
LE: loop exit
PB: predicated region body
PF: predicated region fallthrough
CT: control target
= control target key end

     0   :  { %s2344_s18 = smov 0   ;;  %s3854_s0 = inlined_call_operand.vmem [shape: f32[8,8,512], index: 0, kind: input, shape index: {}]   ;;  %s3855_s1 = inlined_call_operand.vmem [shape: f32[128,512], index: 1, kind: input, shape index: {}]   ;;  %s3856_s2 = inlined_call_operand.vmem [shape: f32[128,512], index: 2, kind: input, shape index: {}]   ;;  %s3857_s3 = inlined_call_operand.vmem [shape: f32[128,512], index: 3, kind: input, shape index: {}]   ;;  %s3858_s4 = inlined_call_operand.vmem [shape: f32[1,512], index: 4, kind: input, shape index: {}]   ;;  %s3859_s5 = inlined_call_operand.vmem [shape: f32[8,8,128], index: 5, kind: output, shape index: {}]  }
   0x1 LB: > { %s2113_s19 = sadd.s32 4294967295, %s2310_s18   ;;  %p2117_p0 = scmp.ge.s32.totalorder %s2310_s18, 1  ;;  %s2310_s18 = sphi %s2344_s18, %s15_s18  }
   0x2   : > { %p189_p1 = scmp.lt.s32.totalorder %s2310_s18, 3 }
   0x4   : > { %p190_p2 = pnand %p2117_p0, %p189_p1 }
   0x6   : > { %193 = sbr.rel (%p190_p2) target bundleno = 2051 (0x803), region = 40 }
   0xb   : > { %s2118_s20 = sshll.u32 %s2113_s19, 2  ;;  %p2123_p4 = scmp.ne.s32.totalorder %s2113_s19, 0 }
   0xc   : > { %p219_p3 = scmp.lt.s32.totalorder %s2118_s20, 7 }
   0xd   : > { %234 = sbr.rel (%p2123_p4) target bundleno = 21 (0x15), region = 44 }
   0xe   : > { %s4138_s20 = smov (!%p219_p3, %s2118_s20), 7 }
   0xf   : > { %s2165_s21 = sshll.u32 %s4138_s20, 5  ;;  %s2122_s22 = sshll.u32 %s4138_s20, 3 }
  0x10   : > { %s2355_s25 = scalar_lea.vmem %s3854_s0, %s2165_s21  ;;  %s2360_s28 = scalar_lea.vmem %s3859_s5, %s2122_s22 }
  0x12   : > { %v2312_v0 = vmov 0.0  }
  0x13   : > { %235 = vst [vmem:[#allocation2] sm:$0xff] %v2312_v0  ;;  %236 = vst [vmem:[#allocation3] sm:$0xff] %v2312_v0 }
  0x14   : > { %237 = vst [vmem:[#allocation4] sm:$0xff] %v2312_v0  ;;  %238 = vst [vmem:[#allocation5] sm:$0xff] %v2312_v0 }
  0x15 PF: > { %v2365_v1 = vld [vmem:[%s3855_s1 + $0x1e8] sm:$0xff]  ;;  %v2370_v2 = vld [vmem:[%s3855_s1 + $0x1e0] sm:$0xff]  ;;  %v3860_v5 = vmov 0.0   ;;  %v2412_v10 = vld [vmem:[%s3855_s1 + $0x1f8] sm:$0xff] }
  0x16   : > { %3955 = vst [vmem:[#allocation7_spill] sm:$0xff] %v2365_v1  ;;  %v2375_v3 = vld [vmem:[%s3855_s1 + $0x1c8] sm:$0xff]  ;;  %372 = vmatprep.subr.mxu0 %v2365_v1  ;;  %v2381_v4 = vld [vmem:[%s3855_s1 + $0x1c0] sm:$0xff]  ;;  %436 = vmatprep.mubr.f32.mxu0 %v3860_v5  ;;  %3956 = vst [vmem:[#allocation8_spill] sm:$0xff] %v2412_v10 }
  0x17   : > { %373 = vmatpush1.msra.mxu0 %v2370_v2  ;;  %v2388_v6 = vld [vmem:[%s3855_s1 + $0x1a8] sm:$0xff]  ;;  %507 = vmatprep.mubr.f32.mxu1 %v3860_v5  ;;  %v2395_v7 = vld [vmem:[%s3855_s1 + $0x1a0] sm:$0xff]  ;;  %v2424_v12 = vld [vmem:[%s3855_s1 + $0x1f0] sm:$0xff] }
  0x18   : > { %374 = vmatprep.subr.mxu0 %v2375_v3  ;;  %v2401_v8 = vld [vmem:[%s3855_s1 + $0x188] sm:$0xff]  ;;  %v2407_v9 = vld [vmem:[%s3855_s1 + $0x180] sm:$0xff]  ;;  %443 = vmatprep.subr.mxu1 %v2412_v10  ;;  %v2436_v14 = vld [vmem:[%s3855_s1 + $0x1d8] sm:$0xff] }
  0x19   : > { %375 = vmatpush1.msra.mxu0 %v2381_v4  ;;  %v2418_v11 = vld [vmem:[%s3855_s1 + $0x168] sm:$0xff]  ;;  %v2430_v13 = vld [vmem:[%s3855_s1 + $0x160] sm:$0xff]  ;;  %444 = vmatpush1.msra.mxu1 %v2424_v12  ;;  %v2441_v15 = vld [vmem:[%s3855_s1 + $0x1d0] sm:$0xff] }
  0x1a   : > { %376 = vmatprep.subr.mxu0 %v2388_v6  ;;  %v2447_v16 = vld [vmem:[%s3855_s1 + $0x148] sm:$0xff]  ;;  %445 = vmatprep.subr.mxu1 %v2436_v14  ;;  %v2453_v17 = vld [vmem:[%s3855_s1 + $0x1b8] sm:$0xff]  ;;  %v2459_v18 = vld [vmem:[%s3855_s1 + $0x140] sm:$0xff] }
  0x1b   : > { %377 = vmatpush1.msra.mxu0 %v2395_v7  ;;  %446 = vmatpush1.msra.mxu1 %v2441_v15  ;;  %v2465_v19 = vld [vmem:[%s3855_s1 + $0x1b0] sm:$0xff]  ;;  %v2470_v20 = vld [vmem:[%s3855_s1 + $0x198] sm:$0xff]  ;;  %v2476_v21 = vld [vmem:[%s3855_s1 + $0x128] sm:$0xff] }
  0x1c   : > { %378 = vmatprep.subr.mxu0 %v2401_v8  ;;  %447 = vmatprep.subr.mxu1 %v2453_v17  ;;  %v2482_v22 = vld [vmem:[%s3855_s1 + $0x190] sm:$0xff]  ;;  %v2488_v23 = vld [vmem:[%s3855_s1 + $0x120] sm:$0xff]  ;;  %v2494_v24 = vld [vmem:[%s3855_s1 + $0x178] sm:$0xff] }
  0x1d   : > { %379 = vmatpush1.msra.mxu0 %v2407_v9  ;;  %448 = vmatpush1.msra.mxu1 %v2465_v19  ;;  %v2500_v25 = vld [vmem:[%s3855_s1 + $0x108] sm:$0xff]  ;;  %v2506_v26 = vld [vmem:[%s3855_s1 + $0x170] sm:$0xff]  ;;  %v2512_v27 = vld [vmem:[%s3855_s1 + $0x100] sm:$0xff] }
  0x1e   : > { %380 = vmatprep.subr.mxu0 %v2418_v11  ;;  %449 = vmatprep.subr.mxu1 %v2470_v20  ;;  %v2518_v28 = vld [vmem:[%s3855_s1 + $0x158] sm:$0xff]  ;;  %v2524_v29 = vld [vmem:[%s3855_s1 + $0xe8] sm:$0xff]  ;;  %v2530_v30 = vld [vmem:[%s3855_s1 + $0x150] sm:$0xff] }
  0x1f   : > { %381 = vmatpush1.msra.mxu0 %v2430_v13  ;;  %450 = vmatpush1.msra.mxu1 %v2482_v22  ;;  %v2536_v31 = vld [vmem:[%s3855_s1 + $0xe0] sm:$0xff]  ;;  %v2542_v32 = vld [vmem:[%s3855_s1 + $0x138] sm:$0xff]  ;;  %v2548_v33 = vld [vmem:[%s3855_s1 + $0xc8] sm:$0xff] }
  0x20   : > { %382 = vmatprep.subr.mxu0 %v2447_v16  ;;  %451 = vmatprep.subr.mxu1 %v2494_v24  ;;  %v2554_v34 = vld [vmem:[%s3855_s1 + $0x130] sm:$0xff]  ;;  %v2560_v35 = vld [vmem:[%s3855_s1 + $0xc0] sm:$0xff]  ;;  %v2566_v36 = vld [vmem:[%s3855_s1 + $0x118] sm:$0xff] }
  0x21   : > { %383 = vmatpush1.msra.mxu0 %v2459_v18  ;;  %452 = vmatpush1.msra.mxu1 %v2506_v26  ;;  %v2572_v37 = vld [vmem:[%s3855_s1 + $0xa8] sm:$0xff]  ;;  %v2578_v38 = vld [vmem:[%s3855_s1 + $0x110] sm:$0xff]  ;;  %v2584_v39 = vld [vmem:[%s3855_s1 + $0xa0] sm:$0xff] }
  0x22   : > { %384 = vmatprep.subr.mxu0 %v2476_v21  ;;  %453 = vmatprep.subr.mxu1 %v2518_v28  ;;  %v2590_v40 = vld [vmem:[%s3855_s1 + $0xf8] sm:$0xff]  ;;  %v2596_v41 = vld [vmem:[%s3855_s1 + $0x88] sm:$0xff]  ;;  %v2602_v42 = vld [vmem:[%s3855_s1 + $0xf0] sm:$0xff] }
  0x23   : > { %385 = vmatpush1.msra.mxu0 %v2488_v23  ;;  %454 = vmatpush1.msra.mxu1 %v2530_v30  ;;  %v2608_v43 = vld [vmem:[%s3855_s1 + $0x80] sm:$0xff]  ;;  %v2614_v44 = vld [vmem:[%s3855_s1 + $0xd8] sm:$0xff]  ;;  %v2620_v45 = vld [vmem:[%s3855_s1 + $0x68] sm:$0xff] }
  0x24   : > { %386 = vmatprep.subr.mxu0 %v2500_v25  ;;  %455 = vmatprep.subr.mxu1 %v2542_v32  ;;  %3957 = vst [vmem:[#allocation9_spill] sm:$0xff] %v2608_v43  ;;  %3958 = vst [vmem:[#allocation10_spill] sm:$0xff] %v2620_v45  ;;  %v2626_v46 = vld [vmem:[%s3855_s1 + $0xd0] sm:$0xff]  ;;  %v2632_v47 = vld [vmem:[%s3855_s1 + $0x60] sm:$0xff] }
  0x25   : > { %387 = vmatpush1.msra.mxu0 %v2512_v27  ;;  %456 = vmatpush1.msra.mxu1 %v2554_v34  ;;  %3959 = vst [vmem:[#allocation11_spill] sm:$0xff] %v2632_v47  ;;  %v2638_v48 = vld [vmem:[%s3855_s1 + $0xb8] sm:$0xff]  ;;  %v2644_v49 = vld [vmem:[%s3855_s1 + $0x48] sm:$0xff]  ;;  %v2650_v50 = vld [vmem:[%s3855_s1 + $0xb0] sm:$0xff] }
  0x26   : > { %388 = vmatprep.subr.mxu0 %v2524_v29  ;;  %457 = vmatprep.subr.mxu1 %v2566_v36  ;;  %3960 = vst [vmem:[#allocation12_spill] sm:$0xff] %v2644_v49  ;;  %v2656_v51 = vld [vmem:[%s3855_s1 + $0x40] sm:$0xff]  ;;  %v2662_v52 = vld [vmem:[%s3855_s1 + $0x98] sm:$0xff]  ;;  %v2668_v53 = vld [vmem:[%s3855_s1 + $0x28] sm:$0xff] }
  0x27   : > { %389 = vmatpush1.msra.mxu0 %v2536_v31  ;;  %458 = vmatpush1.msra.mxu1 %v2578_v38  ;;  %3961 = vst [vmem:[#allocation13_spill] sm:$0xff] %v2656_v51  ;;  %3962 = vst [vmem:[#allocation14_spill] sm:$0xff] %v2668_v53  ;;  %v2674_v54 = vld [vmem:[%s3855_s1 + $0x90] sm:$0xff]  ;;  %v2680_v55 = vld [vmem:[%s3855_s1 + $0x20] sm:$0xff] }
  0x28   : > { %390 = vmatprep.subr.mxu0 %v2548_v33  ;;  %459 = vmatprep.subr.mxu1 %v2590_v40  ;;  %3963 = vst [vmem:[#allocation15_spill] sm:$0xff] %v2674_v54  ;;  %3964 = vst [vmem:[#allocation16_spill] sm:$0xff] %v2680_v55  ;;  %v2686_v56 = vld [vmem:[%s3855_s1 + $0x78] sm:$0xff]  ;;  %v2692_v57 = vld [vmem:[%s3855_s1 + $0x8] sm:$0xff] }
  0x29   : > { %391 = vmatpush1.msra.mxu0 %v2560_v35  ;;  %460 = vmatpush1.msra.mxu1 %v2602_v42  ;;  %3965 = vst [vmem:[#allocation17_spill] sm:$0xff] %v2686_v56  ;;  %3966 = vst [vmem:[#allocation18_spill] sm:$0xff] %v2692_v57  ;;  %v2698_v58 = vld [vmem:[%s3855_s1 + $0x70] sm:$0xff]  ;;  %v2704_v59 = vld [vmem:[%s3855_s1] sm:$0xff] }
  0x2a   : > { %392 = vmatprep.subr.mxu0 %v2572_v37  ;;  %461 = vmatprep.subr.mxu1 %v2614_v44  ;;  %3967 = vst [vmem:[#allocation19_spill] sm:$0xff] %v2698_v58  ;;  %3968 = vst [vmem:[#allocation20_spill] sm:$0xff] %v2704_v59  ;;  %v2710_v60 = vld [vmem:[%s3855_s1 + $0x58] sm:$0xff]  ;;  %v371_v61 = vld [vmem:[#allocation2] sm:$0xff] }
  0x2b   : > { %393 = vmatpush1.msra.mxu0 %v2584_v39  ;;  %462 = vmatpush1.msra.mxu1 %v2626_v46  ;;  %3969 = vst [vmem:[#allocation21_spill] sm:$0xff] %v2710_v60  ;;  %v2717_v62 = vld [vmem:[%s3855_s1 + $0x50] sm:$0xff]  ;;  %v2724_v63 = vld [vmem:[%s3855_s1 + $0x38] sm:$0xff] }
  0x2c   : > { %394 = vmatprep.subr.mxu0 %v2596_v41  ;;  %463 = vmatprep.subr.mxu1 %v2638_v48  ;;  %3970 = vst [vmem:[#allocation22_spill] sm:$0xff] %v2717_v62  ;;  %3971 = vst [vmem:[#allocation23_spill] sm:$0xff] %v2724_v63  ;;  %v2731_v0 = vld [vmem:[%s3855_s1 + $0x30] sm:$0xff]  ;;  %v2737_v5 = vld [vmem:[%s3855_s1 + $0x18] sm:$0xff] }
  0x2d   : > { %395 = vmatpush1.msra.mxu0 %v2608_v43  ;;  %464 = vmatpush1.msra.mxu1 %v2650_v50  ;;  %3972 = vst [vmem:[#allocation24_spill] sm:$0xff] %v2731_v0  ;;  %3973 = vst [vmem:[#allocation25_spill] sm:$0xff] %v2737_v5 }
  0x2e   : > { %396 = vmatprep.subr.mxu0 %v2620_v45  ;;  %465 = vmatprep.subr.mxu1 %v2662_v52 }
  0x2f   : > { %397 = vmatpush1.msra.mxu0 %v2632_v47  ;;  %466 = vmatpush1.msra.mxu1 %v2674_v54 }
  0x30   : > { %398 = vmatprep.subr.mxu0 %v2644_v49  ;;  %467 = vmatprep.subr.mxu1 %v2686_v56 }
  0x31   : > { %399 = vmatpush1.msra.mxu0 %v2656_v51  ;;  %468 = vmatpush1.msra.mxu1 %v2698_v58 }
  0x32   : > { %400 = vmatprep.subr.mxu0 %v2668_v53  ;;  %469 = vmatprep.subr.mxu1 %v2710_v60 }
  0x33   : > { %401 = vmatpush1.msra.mxu0 %v2680_v55  ;;  %470 = vmatpush1.msra.mxu1 %v2717_v62 }
  0x34   : > { %402 = vmatprep.subr.mxu0 %v2692_v57  ;;  %471 = vmatprep.subr.mxu1 %v2724_v63 }
  0x35   : > { %403 = vmatpush1.msra.mxu0 %v2704_v59  ;;  %v2743_v59 = vld [vmem:[%s3855_s1 + $0x10] sm:$0xff]  ;;  %472 = vmatpush1.msra.mxu1 %v2731_v0 }
  0x36   : > { %437 = vmatmul.mubr.f32.vlgmr.msra.gmra.mxu0 %v371_v61  ;;  %3974 = vst [vmem:[#allocation26_spill] sm:$0xff] %v2743_v59  ;;  %552 = vmatprep.subr.mxu0 %v2365_v1 }
  0x37   : > { %553 = vmatpush1.msra.mxu0 %v2370_v2  ;;  %473 = vmatprep.subr.mxu1 %v2737_v5 }
  0x38   : > { %554 = vmatprep.subr.mxu0 %v2375_v3  ;;  %474 = vmatpush1.msra.mxu1 %v2743_v59 }
  0x39   : > { %555 = vmatpush1.msra.mxu0 %v2381_v4  ;;  %508 = vmatmul.mubr.f32.vlgmr.msra.gmra.mxu1 %v371_v61  ;;  %v3975_v61 = vld [vmem:[#allocation20_spill] sm:$0xff] }
  0x3a   : > { %623 = vmatprep.subr.mxu1 %v2412_v10  ;;  %556 = vmatprep.subr.mxu0 %v2388_v6 }
  0x3b   : > { %624 = vmatpush1.msra.mxu1 %v2424_v12  ;;  %557 = vmatpush1.msra.mxu0 %v2395_v7 }
  0x3c   : > { %625 = vmatprep.subr.mxu1 %v2436_v14  ;;  %558 = vmatprep.subr.mxu0 %v2401_v8 }
  0x3d   : > { %626 = vmatpush1.msra.mxu1 %v2441_v15  ;;  %559 = vmatpush1.msra.mxu0 %v2407_v9 }
  0x3e   : > { %627 = vmatprep.subr.mxu1 %v2453_v17  ;;  %560 = vmatprep.subr.mxu0 %v2418_v11 }
  0x3f   : > { %628 = vmatpush1.msra.mxu1 %v2465_v19  ;;  %561 = vmatpush1.msra.mxu0 %v2430_v13 }
  0x40   : > { %629 = vmatprep.subr.mxu1 %v2470_v20  ;;  %562 = vmatprep.subr.mxu0 %v2447_v16 }
  0x41   : > { %630 = vmatpush1.msra.mxu1 %v2482_v22  ;;  %563 = vmatpush1.msra.mxu0 %v2459_v18 }
  0x42   : > { %631 = vmatprep.subr.mxu1 %v2494_v24  ;;  %564 = vmatprep.subr.mxu0 %v2476_v21 }
  0x43   : > { %632 = vmatpush1.msra.mxu1 %v2506_v26  ;;  %565 = vmatpush1.msra.mxu0 %v2488_v23 }
  0x44   : > { %633 = vmatprep.subr.mxu1 %v2518_v28  ;;  %566 = vmatprep.subr.mxu0 %v2500_v25 }
  0x45   : > { %634 = vmatpush1.msra.mxu1 %v2530_v30  ;;  %567 = vmatpush1.msra.mxu0 %v2512_v27 }
  0x46   : > { %635 = vmatprep.subr.mxu1 %v2542_v32  ;;  %568 = vmatprep.subr.mxu0 %v2524_v29 }
  0x47   : > { %636 = vmatpush1.msra.mxu1 %v2554_v34  ;;  %569 = vmatpush1.msra.mxu0 %v2536_v31 }
  0x48   : > { %637 = vmatprep.subr.mxu1 %v2566_v36  ;;  %570 = vmatprep.subr.mxu0 %v2548_v33 }
  0x49   : > { %638 = vmatpush1.msra.mxu1 %v2578_v38  ;;  %571 = vmatpush1.msra.mxu0 %v2560_v35 }
  0x4a   : > { %639 = vmatprep.subr.mxu1 %v2590_v40  ;;  %572 = vmatprep.subr.mxu0 %v2572_v37 }
  0x4b   : > { %640 = vmatpush1.msra.mxu1 %v2602_v42  ;;  %573 = vmatpush1.msra.mxu0 %v2584_v39 }
  0x4c   : > { %641 = vmatprep.subr.mxu1 %v2614_v44  ;;  %574 = vmatprep.subr.mxu0 %v2596_v41 }
  0x4d   : > { %642 = vmatpush1.msra.mxu1 %v2626_v46  ;;  %575 = vmatpush1.msra.mxu0 %v2608_v43 }
  0x4e   : > { %643 = vmatprep.subr.mxu1 %v2638_v48  ;;  %576 = vmatprep.subr.mxu0 %v2620_v45 }
  0x4f   : > { %644 = vmatpush1.msra.mxu1 %v2650_v50  ;;  %577 = vmatpush1.msra.mxu0 %v2632_v47 }
  0x50   : > { %645 = vmatprep.subr.mxu1 %v2662_v52  ;;  %578 = vmatprep.subr.mxu0 %v2644_v49  ;;  %v370_v49 = vld [vmem:[%s2355_s25 + $0x18] sm:$0xff] }
  0x51   : > { %646 = vmatpush1.msra.mxu1 %v2674_v54  ;;  %579 = vmatpush1.msra.mxu0 %v2656_v51  ;;  %v3976_v51 = vmov 0.0  }
  0x52   : > { %647 = vmatprep.subr.mxu1 %v2686_v56  ;;  %580 = vmatprep.subr.mxu0 %v2668_v53 }
  0x53   : > { %648 = vmatpush1.msra.mxu1 %v2698_v58  ;;  %581 = vmatpush1.msra.mxu0 %v2680_v55  ;;  %v369_v58 = vld [vmem:[%s2355_s25 + $0x10] sm:$0xff] }
  0x54   : > { %649 = vmatprep.subr.mxu1 %v2710_v60  ;;  %582 = vmatprep.subr.mxu0 %v2692_v57  ;;  %v367_v57 = vld [vmem:[%s2355_s25] sm:$0xff] }
  0x55   : > { %650 = vmatpush1.msra.mxu1 %v2717_v62  ;;  %583 = vmatpush1.msra.mxu0 %v3975_v61 }
  0x56   : > { %651 = vmatprep.subr.mxu1 %v2724_v63  ;;  %616 = vmatprep.mubr.f32.mxu0 %v3976_v51  ;;  %v368_v63 = vld [vmem:[%s2355_s25 + $0x8] sm:$0xff] }
  0x57   : > { %652 = vmatpush1.msra.mxu1 %v2731_v0  ;;  %687 = vmatprep.mubr.f32.mxu1 %v3976_v51 }
  0x58   : > { %653 = vmatprep.subr.mxu1 %v2737_v5  ;;  %732 = vmatprep.subr.mxu0 %v2365_v1 }
  0x59   : > { %654 = vmatpush1.msra.mxu1 %v2743_v59 }
  0x5a   : > { %803 = vmatprep.subr.mxu1 %v2412_v10 }
  0xf6   : > { %v438_v55 = vpop.f32.mrf.mxu0 }
  0xf7   : > { %v514_v61 = vadd.f32 %v438_v55, %v367_v57 }
  0xf8   : > { %v440_v53 = vpop.f32.mrf.mxu0 }
  0xf9   : > { %v2124_v0 = vmul.f32 -1.442695, %v514_v61  ;;  %v515_v62 = vadd.f32 %v440_v53, %v368_v63  ;;  %v509_v5 = vpop.f32.mrf.mxu1 }
  0xfa   : > { %v516_v47 = vadd.f32 %v509_v5, %v369_v58  ;;  %v3984_v58 = vld [vmem:[#allocation12_spill] sm:$0xff] }
  0xfb   : > { %2176 = vpow2.f32 %v2124_v0  ;;  %v2125_v60 = vmul.f32 -1.442695, %v515_v62  ;;  %v511_v51 = vpop.f32.mrf.mxu1  ;;  %v518_v62 = vld [vmem:[#allocation3] sm:$0xff] }
  0xfc   : > { %v517_v59 = vadd.f32 %v511_v51, %v370_v49  ;;  %v3980_v49 = vld [vmem:[#allocation10_spill] sm:$0xff]  ;;  %v3981_v51 = vld [vmem:[#allocation17_spill] sm:$0xff] }
  0xfd   : > { %2178 = vpow2.f32 %v2125_v60 }
  0xfe   : > { %v2126_v56 = vmul.f32 -1.442695, %v517_v59  ;;  %2180 = vtanh.f32 %v516_v47  ;;  %v3985_v59 = vld [vmem:[#allocation21_spill] sm:$0xff] }
 0x100   : > { %2182 = vpow2.f32 %v2126_v56  ;;  %v3983_v56 = vld [vmem:[#allocation19_spill] sm:$0xff] }
 0x108   : > { %v2177_v1 = vpop.eup %2176 }
 0x109   : > { %v522_v45 = vadd.f32 1.0, %v2177_v1 }
 0x10a   : > { %v2179_v10 = vpop.eup %2178 }
 0x10b   : > { %2184 = vrcp.f32 %v522_v45  ;;  %v528_v55 = vadd.f32 1.0, %v2179_v10  ;;  %v2181_v57 = vpop.eup %2180  ;;  %v3978_v10 = vld [vmem:[#allocation9_spill] sm:$0xff]  ;;  %v3979_v45 = vld [vmem:[#allocation15_spill] sm:$0xff] }
 0x10d   : > { %2186 = vrcp.f32 %v528_v55  ;;  %v2183_v53 = vpop.eup %2182  ;;  %v3986_v55 = vld [vmem:[#allocation13_spill] sm:$0xff] }
 0x10e   : > { %v535_v60 = vadd.f32 1.0, %v2183_v53  ;;  %v3988_v53 = vld [vmem:[#allocation14_spill] sm:$0xff] }
 0x110   : > { %2188 = vrcp.f32 %v535_v60  ;;  %v3992_v60 = vld [vmem:[#allocation18_spill] sm:$0xff] }
 0x118   : > { %v2185_v63 = vpop.eup %2184 }
 0x119   : > { %v539_v54 = vmul.f32 %v2185_v63, %v2181_v57  ;;  %v3987_v57 = vld [vmem:[#allocation22_spill] sm:$0xff]  ;;  %v3989_v63 = vld [vmem:[#allocation23_spill] sm:$0xff] }
 0x11a   : > { %v2187_v0 = vpop.eup %2186 }
 0x11b   : > { %v538_v61 = vmul.f32 %v2187_v0, %v518_v62  ;;  %v3990_v62 = vld [vmem:[#allocation16_spill] sm:$0xff] }
 0x11c   : > { %v3991_v0 = vld [vmem:[#allocation24_spill] sm:$0xff] }
 0x11d   : > { %v2820_v43 = vadd.f32 %v539_v54, %v538_v61  ;;  %v2189_v1 = vpop.eup %2188  ;;  %v3982_v54 = vld [vmem:[#allocation11_spill] sm:$0xff]  ;;  %v3993_v61 = vld [vmem:[#allocation25_spill] sm:$0xff] }
 0x11f   : > { %2190 = vtanh.f32 %v2820_v43 }
 0x12c   : > { %v2191_v5 = vpop.eup %2190 }
 0x12d   : > { %v2823_v47 = vmul.f32 %v2191_v5, %v2189_v1  ;;  %v3994_v1 = vld [vmem:[#allocation20_spill] sm:$0xff]  ;;  %v3995_v5 = vmov 0.0  }
 0x12f   : > { %3977 = vst [vmem:[#allocation27_spill] sm:$0xff] %v2823_v47  ;;  %617 = vmatmul.mubr.f32.vlgmr.msra.gmra.mxu0 %v2823_v47  ;;  %688 = vmatmul.mubr.f32.vlgmr.msra.gmra.mxu1 %v2823_v47  ;;  %v3996_v47 = vld [vmem:[#allocation26_spill] sm:$0xff] }
 0x130   : > { %733 = vmatpush1.msra.mxu0 %v2370_v2  ;;  %804 = vmatpush1.msra.mxu1 %v2424_v12 }
 0x131   : > { %734 = vmatprep.subr.mxu0 %v2375_v3  ;;  %805 = vmatprep.subr.mxu1 %v2436_v14 }
 0x132   : > { %735 = vmatpush1.msra.mxu0 %v2381_v4  ;;  %806 = vmatpush1.msra.mxu1 %v2441_v15 }
 0x133   : > { %736 = vmatprep.subr.mxu0 %v2388_v6  ;;  %807 = vmatprep.subr.mxu1 %v2453_v17 }
 0x134   : > { %737 = vmatpush1.msra.mxu0 %v2395_v7  ;;  %808 = vmatpush1.msra.mxu1 %v2465_v19 }
 0x135   : > { %738 = vmatprep.subr.mxu0 %v2401_v8  ;;  %809 = vmatprep.subr.mxu1 %v2470_v20 }
 0x136   : > { %739 = vmatpush1.msra.mxu0 %v2407_v9  ;;  %810 = vmatpush1.msra.mxu1 %v2482_v22 }
 0x137   : > { %740 = vmatprep.subr.mxu0 %v2418_v11  ;;  %811 = vmatprep.subr.mxu1 %v2494_v24 }
 0x138   : > { %741 = vmatpush1.msra.mxu0 %v2430_v13  ;;  %812 = vmatpush1.msra.mxu1 %v2506_v26 }
 0x139   : > { %742 = vmatprep.subr.mxu0 %v2447_v16  ;;  %813 = vmatprep.subr.mxu1 %v2518_v28 }
 0x13a   : > { %743 = vmatpush1.msra.mxu0 %v2459_v18  ;;  %814 = vmatpush1.msra.mxu1 %v2530_v30 }
 0x13b   : > { %744 = vmatprep.subr.mxu0 %v2476_v21  ;;  %815 = vmatprep.subr.mxu1 %v2542_v32 }
 0x13c   : > { %745 = vmatpush1.msra.mxu0 %v2488_v23  ;;  %816 = vmatpush1.msra.mxu1 %v2554_v34 }
 0x13d   : > { %746 = vmatprep.subr.mxu0 %v2500_v25  ;;  %817 = vmatprep.subr.mxu1 %v2566_v36 }
 0x13e   : > { %747 = vmatpush1.msra.mxu0 %v2512_v27  ;;  %818 = vmatpush1.msra.mxu1 %v2578_v38 }
 0x13f   : > { %748 = vmatprep.subr.mxu0 %v2524_v29  ;;  %819 = vmatprep.subr.mxu1 %v2590_v40 }
 0x140   : > { %749 = vmatpush1.msra.mxu0 %v2536_v31  ;;  %820 = vmatpush1.msra.mxu1 %v2602_v42 }
 0x141   : > { %750 = vmatprep.subr.mxu0 %v2548_v33  ;;  %821 = vmatprep.subr.mxu1 %v2614_v44 }
 0x142   : > { %751 = vmatpush1.msra.mxu0 %v2560_v35  ;;  %822 = vmatpush1.msra.mxu1 %v2626_v46 }
 0x143   : > { %752 = vmatprep.subr.mxu0 %v2572_v37  ;;  %823 = vmatprep.subr.mxu1 %v2638_v48 }
 0x144   : > { %753 = vmatpush1.msra.mxu0 %v2584_v39  ;;  %824 = vmatpush1.msra.mxu1 %v2650_v50 }
 0x145   : > { %754 = vmatprep.subr.mxu0 %v2596_v41  ;;  %825 = vmatprep.subr.mxu1 %v2662_v52 }
 0x146   : > { %755 = vmatpush1.msra.mxu0 %v3978_v10  ;;  %826 = vmatpush1.msra.mxu1 %v3979_v45 }
 0x147   : > { %756 = vmatprep.subr.mxu0 %v3980_v49  ;;  %827 = vmatprep.subr.mxu1 %v3981_v51 }
 0x148   : > { %757 = vmatpush1.msra.mxu0 %v3982_v54  ;;  %828 = vmatpush1.msra.mxu1 %v3983_v56  ;;  %v2130_v56 = vld [vmem:[%s2355_s25 + $0x38] sm:$0xff] }
 0x149   : > { %758 = vmatprep.subr.mxu0 %v3984_v58  ;;  %829 = vmatprep.subr.mxu1 %v3985_v59 }
 0x14a   : > { %759 = vmatpush1.msra.mxu0 %v3986_v55  ;;  %830 = vmatpush1.msra.mxu1 %v3987_v57  ;;  %v2128_v57 = vld [vmem:[%s2355_s25 + $0x28] sm:$0xff] }
 0x14b   : > { %760 = vmatprep.subr.mxu0 %v3988_v53  ;;  %831 = vmatprep.subr.mxu1 %v3989_v63  ;;  %v3997_v53 = vld [vmem:[#allocation7_spill] sm:$0xff]  ;;  %v3998_v63 = vld [vmem:[#allocation8_spill] sm:$0xff] }
 0x14c   : > { %761 = vmatpush1.msra.mxu0 %v3990_v62  ;;  %832 = vmatpush1.msra.mxu1 %v3991_v0  ;;  %v2127_v62 = vld [vmem:[%s2355_s25 + $0x20] sm:$0xff] }
 0x14d   : > { %762 = vmatprep.subr.mxu0 %v3992_v60  ;;  %833 = vmatprep.subr.mxu1 %v3993_v61 }
 0x14e   : > { %763 = vmatpush1.msra.mxu0 %v3994_v1  ;;  %796 = vmatprep.mubr.f32.mxu0 %v3995_v5 }
 0x14f   : > { %834 = vmatpush1.msra.mxu1 %v3996_v47  ;;  %867 = vmatprep.mubr.f32.mxu1 %v3995_v5  ;;  %v2129_v5 = vld [vmem:[%s2355_s25 + $0x30] sm:$0xff] }
 0x150   : > { %912 = vmatprep.subr.mxu0 %v3997_v53  ;;  %983 = vmatprep.subr.mxu1 %v3998_v63 }
 0x1ef   : > { %v618_v0 = vpop.f32.mrf.mxu0  ;;  %v689_v1 = vpop.f32.mrf.mxu1 }
 0x1f0   : > { %v694_v60 = vadd.f32 %v2127_v62, %v618_v0  ;;  %v696_v49 = vadd.f32 %v2129_v5, %v689_v1 }
 0x1f1   : > { %v620_v55 = vpop.f32.mrf.mxu0  ;;  %v691_v47 = vpop.f32.mrf.mxu1 }
 0x1f2   : > { %v2131_v61 = vmul.f32 -1.442695, %v694_v60  ;;  %v695_v59 = vadd.f32 %v2128_v57, %v620_v55  ;;  %v697_v54 = vadd.f32 %v2130_v56, %v691_v47 }
 0x1f4   : > { %2192 = vpow2.f32 %v2131_v61  ;;  %v2132_v58 = vmul.f32 -1.442695, %v695_v59  ;;  %v2133_v51 = vmul.f32 -1.442695, %v697_v54 }
 0x1f6   : > { %2194 = vpow2.f32 %v2132_v58 }
 0x1f7   : > { %2196 = vpow2.f32 %v2133_v51 }
 0x201   : > { %v2193_v53 = vpop.eup %2192 }
 0x202   : > { %v702_v45 = vadd.f32 1.0, %v2193_v53  ;;  %v1150_v53 = vld [vmem:[%s3856_s2 + $0x1e0] sm:$0xff] }
 0x203   : > { %v2195_v63 = vpop.eup %2194 }
 0x204   : > { %2198 = vrcp.f32 %v702_v45  ;;  %v708_v10 = vadd.f32 1.0, %v2195_v63  ;;  %v2197_v62 = vpop.eup %2196  ;;  %v1152_v63 = vld [vmem:[%s3856_s2 + $0x1f0] sm:$0xff] }
 0x205   : > { %2200 = vtanh.f32 %v696_v49  ;;  %v715_v59 = vadd.f32 1.0, %v2197_v62  ;;  %v1147_v62 = vld [vmem:[%s3856_s2 + $0x1c8] sm:$0xff] }
 0x206   : > { %2202 = vrcp.f32 %v708_v10 }
 0x207   : > { %2204 = vrcp.f32 %v715_v59  ;;  %v1143_v59 = vld [vmem:[%s3856_s2 + $0x1a8] sm:$0xff] }
 0x211   : > { %v2199_v55 = vpop.eup %2198 }
 0x212   : > { %v2201_v57 = vpop.eup %2200 }
 0x213   : > { %v2203_v0 = vpop.eup %2202  ;;  %v719_v58 = vmul.f32 %v2201_v57, %v2199_v55  ;;  %v1149_v55 = vld [vmem:[%s3856_s2 + $0x1d8] sm:$0xff]  ;;  %v1146_v57 = vld [vmem:[%s3856_s2 + $0x1c0] sm:$0xff] }
 0x214   : > { %v718_v60 = vmul.f32 %v2203_v0, %v2820_v43  ;;  %v2205_v54 = vpop.eup %2204  ;;  %v1148_v0 = vld [vmem:[%s3856_s2 + $0x1d0] sm:$0xff] }
 0x216   : > { %v2898_v47 = vadd.f32 %v719_v58, %v718_v60  ;;  %v1145_v58 = vld [vmem:[%s3856_s2 + $0x1b8] sm:$0xff]  ;;  %v1142_v60 = vld [vmem:[%s3856_s2 + $0x1a0] sm:$0xff] }
 0x218   : > { %2206 = vtanh.f32 %v2898_v47 }
 0x225   : > { %v2207_v56 = vpop.eup %2206 }
 0x226   : > { %v2901_v51 = vmul.f32 %v2207_v56, %v2205_v54  ;;  %v1139_v54 = vld [vmem:[%s3856_s2 + $0x188] sm:$0xff]  ;;  %v1141_v56 = vld [vmem:[%s3856_s2 + $0x198] sm:$0xff] }
 0x228   : > { %797 = vmatmul.mubr.f32.vlgmr.msra.gmra.mxu0 %v2901_v51  ;;  %868 = vmatmul.mubr.f32.vlgmr.msra.gmra.mxu1 %v2901_v51 }
 0x229   : > { %913 = vmatpush1.msra.mxu0 %v2370_v2  ;;  %984 = vmatpush1.msra.mxu1 %v2424_v12  ;;  %v3999_v2 = vld [vmem:[#allocation9_spill] sm:$0xff] }
 0x22a   : > { %914 = vmatprep.subr.mxu0 %v2375_v3  ;;  %985 = vmatprep.subr.mxu1 %v2436_v14  ;;  %v4000_v3 = vld [vmem:[#allocation15_spill] sm:$0xff]  ;;  %v4007_v12 = vld [vmem:[#allocation13_spill] sm:$0xff]  ;;  %v4009_v14 = vld [vmem:[#allocation14_spill] sm:$0xff] }
 0x22b   : > { %915 = vmatpush1.msra.mxu0 %v2381_v4  ;;  %986 = vmatpush1.msra.mxu1 %v2441_v15  ;;  %v4001_v4 = vld [vmem:[#allocation10_spill] sm:$0xff]  ;;  %v4010_v15 = vld [vmem:[#allocation23_spill] sm:$0xff] }
 0x22c   : > { %916 = vmatprep.subr.mxu0 %v2388_v6  ;;  %987 = vmatprep.subr.mxu1 %v2453_v17  ;;  %v4002_v6 = vld [vmem:[#allocation17_spill] sm:$0xff]  ;;  %v4012_v17 = vld [vmem:[#allocation24_spill] sm:$0xff] }
 0x22d   : > { %917 = vmatpush1.msra.mxu0 %v2395_v7  ;;  %988 = vmatpush1.msra.mxu1 %v2465_v19  ;;  %v4003_v7 = vld [vmem:[#allocation11_spill] sm:$0xff]  ;;  %v4014_v19 = vld [vmem:[#allocation25_spill] sm:$0xff] }
 0x22e   : > { %918 = vmatprep.subr.mxu0 %v2401_v8  ;;  %989 = vmatprep.subr.mxu1 %v2470_v20  ;;  %v4004_v8 = vld [vmem:[#allocation19_spill] sm:$0xff]  ;;  %v4015_v20 = vld [vmem:[#allocation20_spill] sm:$0xff] }
 0x22f   : > { %919 = vmatpush1.msra.mxu0 %v2407_v9  ;;  %990 = vmatpush1.msra.mxu1 %v2482_v22  ;;  %v4005_v9 = vld [vmem:[#allocation12_spill] sm:$0xff]  ;;  %v4017_v22 = vmov 0.0  }
 0x230   : > { %920 = vmatprep.subr.mxu0 %v2418_v11  ;;  %991 = vmatprep.subr.mxu1 %v2494_v24  ;;  %v4006_v11 = vld [vmem:[#allocation21_spill] sm:$0xff]  ;;  %v1153_v24 = vld [vmem:[%s3856_s2 + $0x1f8] sm:$0xff] }
 0x231   : > { %921 = vmatpush1.msra.mxu0 %v2430_v13  ;;  %992 = vmatpush1.msra.mxu1 %v2506_v26  ;;  %v4008_v13 = vld [vmem:[#allocation22_spill] sm:$0xff] }
 0x232   : > { %922 = vmatprep.subr.mxu0 %v2447_v16  ;;  %993 = vmatprep.subr.mxu1 %v2518_v28  ;;  %v4011_v16 = vld [vmem:[#allocation16_spill] sm:$0xff] }
 0x233   : > { %923 = vmatpush1.msra.mxu0 %v2459_v18  ;;  %994 = vmatpush1.msra.mxu1 %v2530_v30  ;;  %v4013_v18 = vld [vmem:[#allocation18_spill] sm:$0xff] }
 0x234   : > { %924 = vmatprep.subr.mxu0 %v2476_v21  ;;  %995 = vmatprep.subr.mxu1 %v2542_v32  ;;  %v4016_v21 = vld [vmem:[#allocation26_spill] sm:$0xff] }
 0x235   : > { %925 = vmatpush1.msra.mxu0 %v2488_v23  ;;  %996 = vmatpush1.msra.mxu1 %v2554_v34  ;;  %v1151_v23 = vld [vmem:[%s3856_s2 + $0x1e8] sm:$0xff]  ;;  %v2137_v34 = vld [vmem:[%s2355_s25 + $0x58] sm:$0xff] }
 0x236   : > { %926 = vmatprep.subr.mxu0 %v2500_v25  ;;  %997 = vmatprep.subr.mxu1 %v2566_v36  ;;  %v2134_v25 = vld [vmem:[%s2355_s25 + $0x40] sm:$0xff] }
 0x237   : > { %927 = vmatpush1.msra.mxu0 %v2512_v27  ;;  %998 = vmatpush1.msra.mxu1 %v2578_v38  ;;  %v2135_v27 = vld [vmem:[%s2355_s25 + $0x48] sm:$0xff] }
 0x238   : > { %928 = vmatprep.subr.mxu0 %v2524_v29  ;;  %999 = vmatprep.subr.mxu1 %v2590_v40 }
 0x239   : > { %929 = vmatpush1.msra.mxu0 %v2536_v31  ;;  %1000 = vmatpush1.msra.mxu1 %v2602_v42 }
 0x23a   : > { %930 = vmatprep.subr.mxu0 %v2548_v33  ;;  %1001 = vmatprep.subr.mxu1 %v2614_v44 }
 0x23b   : > { %931 = vmatpush1.msra.mxu0 %v2560_v35  ;;  %1002 = vmatpush1.msra.mxu1 %v2626_v46 }
 0x23c   : > { %932 = vmatprep.subr.mxu0 %v2572_v37  ;;  %1003 = vmatprep.subr.mxu1 %v2638_v48  ;;  %v2136_v37 = vld [vmem:[%s2355_s25 + $0x50] sm:$0xff] }
 0x23d   : > { %933 = vmatpush1.msra.mxu0 %v2584_v39  ;;  %1004 = vmatpush1.msra.mxu1 %v2650_v50 }
 0x23e   : > { %934 = vmatprep.subr.mxu0 %v2596_v41  ;;  %1005 = vmatprep.subr.mxu1 %v2662_v52 }
 0x23f   : > { %935 = vmatpush1.msra.mxu0 %v3999_v2  ;;  %1006 = vmatpush1.msra.mxu1 %v4000_v3  ;;  %v1138_v2 = vld [vmem:[%s3856_s2 + $0x180] sm:$0xff]  ;;  %v1140_v3 = vld [vmem:[%s3856_s2 + $0x190] sm:$0xff] }
 0x240   : > { %936 = vmatprep.subr.mxu0 %v4001_v4  ;;  %1007 = vmatprep.subr.mxu1 %v4002_v6  ;;  %v1135_v4 = vld [vmem:[%s3856_s2 + $0x168] sm:$0xff]  ;;  %v1137_v6 = vld [vmem:[%s3856_s2 + $0x178] sm:$0xff] }
 0x241   : > { %937 = vmatpush1.msra.mxu0 %v4003_v7  ;;  %1008 = vmatpush1.msra.mxu1 %v4004_v8  ;;  %v1134_v7 = vld [vmem:[%s3856_s2 + $0x160] sm:$0xff]  ;;  %v1136_v8 = vld [vmem:[%s3856_s2 + $0x170] sm:$0xff] }
 0x242   : > { %938 = vmatprep.subr.mxu0 %v4005_v9  ;;  %1009 = vmatprep.subr.mxu1 %v4006_v11  ;;  %v1131_v9 = vld [vmem:[%s3856_s2 + $0x148] sm:$0xff]  ;;  %v1133_v11 = vld [vmem:[%s3856_s2 + $0x158] sm:$0xff] }
 0x243   : > { %939 = vmatpush1.msra.mxu0 %v4007_v12  ;;  %1010 = vmatpush1.msra.mxu1 %v4008_v13  ;;  %v1130_v12 = vld [vmem:[%s3856_s2 + $0x140] sm:$0xff]  ;;  %v1132_v13 = vld [vmem:[%s3856_s2 + $0x150] sm:$0xff] }
 0x244   : > { %940 = vmatprep.subr.mxu0 %v4009_v14  ;;  %1011 = vmatprep.subr.mxu1 %v4010_v15  ;;  %v1127_v14 = vld [vmem:[%s3856_s2 + $0x128] sm:$0xff]  ;;  %v1129_v15 = vld [vmem:[%s3856_s2 + $0x138] sm:$0xff] }
 0x245   : > { %941 = vmatpush1.msra.mxu0 %v4011_v16  ;;  %1012 = vmatpush1.msra.mxu1 %v4012_v17  ;;  %v1126_v16 = vld [vmem:[%s3856_s2 + $0x120] sm:$0xff]  ;;  %v1128_v17 = vld [vmem:[%s3856_s2 + $0x130] sm:$0xff] }
 0x246   : > { %942 = vmatprep.subr.mxu0 %v4013_v18  ;;  %1013 = vmatprep.subr.mxu1 %v4014_v19  ;;  %v1123_v18 = vld [vmem:[%s3856_s2 + $0x108] sm:$0xff]  ;;  %v1125_v19 = vld [vmem:[%s3856_s2 + $0x118] sm:$0xff] }
 0x247   : > { %943 = vmatpush1.msra.mxu0 %v4015_v20  ;;  %1014 = vmatpush1.msra.mxu1 %v4016_v21  ;;  %v1122_v20 = vld [vmem:[%s3856_s2 + $0x100] sm:$0xff]  ;;  %v1124_v21 = vld [vmem:[%s3856_s2 + $0x110] sm:$0xff] }
 0x248   : > { %976 = vmatprep.mubr.f32.mxu0 %v4017_v22  ;;  %1047 = vmatprep.mubr.f32.mxu1 %v4017_v22 }
 0x249   : > { %1176 = vmatprep.subr.mxu0 %v1151_v23  ;;  %1265 = vmatprep.subr.mxu1 %v1153_v24  ;;  %v1119_v23 = vld [vmem:[%s3856_s2 + $0xe8] sm:$0xff]  ;;  %v1121_v24 = vld [vmem:[%s3856_s2 + $0xf8] sm:$0xff] }
 0x2e8   : > { %v798_v26 = vpop.f32.mrf.mxu0  ;;  %v869_v32 = vpop.f32.mrf.mxu1 }
 0x2e9   : > { %v874_v28 = vadd.f32 %v2134_v25, %v798_v26  ;;  %v876_v40 = vadd.f32 %v2136_v37, %v869_v32  ;;  %v1118_v25 = vld [vmem:[%s3856_s2 + $0xe0] sm:$0xff]  ;;  %v1120_v26 = vld [vmem:[%s3856_s2 + $0xf0] sm:$0xff]  ;;  %v1113_v32 = vld [vmem:[%s3856_s2 + $0xb8] sm:$0xff] }
 0x2ea   : > { %v800_v29 = vpop.f32.mrf.mxu0  ;;  %v871_v35 = vpop.f32.mrf.mxu1  ;;  %v1106_v37 = vld [vmem:[%s3856_s2 + $0x80] sm:$0xff] }
 0x2eb   : > { %v2138_v30 = vmul.f32 -1.442695, %v874_v28  ;;  %v875_v31 = vadd.f32 %v2135_v27, %v800_v29  ;;  %v877_v36 = vadd.f32 %v2137_v34, %v871_v35  ;;  %v1115_v27 = vld [vmem:[%s3856_s2 + $0xc8] sm:$0xff]  ;;  %v1117_v28 = vld [vmem:[%s3856_s2 + $0xd8] sm:$0xff]  ;;  %v1114_v29 = vld [vmem:[%s3856_s2 + $0xc0] sm:$0xff] }
 0x2ec   : > { %v1112_v34 = vld [vmem:[%s3856_s2 + $0xb0] sm:$0xff]  ;;  %v1107_v35 = vld [vmem:[%s3856_s2 + $0x88] sm:$0xff] }
 0x2ed   : > { %2208 = vpow2.f32 %v2138_v30  ;;  %v2139_v33 = vmul.f32 -1.442695, %v875_v31  ;;  %v2140_v38 = vmul.f32 -1.442695, %v877_v36  ;;  %v1116_v30 = vld [vmem:[%s3856_s2 + $0xd0] sm:$0xff]  ;;  %v1111_v31 = vld [vmem:[%s3856_s2 + $0xa8] sm:$0xff] }
 0x2ee   : > { %v1109_v36 = vld [vmem:[%s3856_s2 + $0x98] sm:$0xff] }
 0x2ef   : > { %2210 = vpow2.f32 %v2139_v33  ;;  %v1110_v33 = vld [vmem:[%s3856_s2 + $0xa0] sm:$0xff] }
 0x2f0   : > { %2212 = vpow2.f32 %v2140_v38  ;;  %v1108_v38 = vld [vmem:[%s3856_s2 + $0x90] sm:$0xff] }
 0x2fa   : > { %v2209_v39 = vpop.eup %2208 }
 0x2fb   : > { %v882_v41 = vadd.f32 1.0, %v2209_v39  ;;  %v1103_v39 = vld [vmem:[%s3856_s2 + $0x68] sm:$0xff] }
 0x2fc   : > { %v2211_v42 = vpop.eup %2210 }
 0x2fd   : > { %2214 = vrcp.f32 %v882_v41  ;;  %v888_v43 = vadd.f32 1.0, %v2211_v42  ;;  %v2213_v44 = vpop.eup %2212  ;;  %v1102_v41 = vld [vmem:[%s3856_s2 + $0x60] sm:$0xff]  ;;  %v1104_v42 = vld [vmem:[%s3856_s2 + $0x70] sm:$0xff] }
 0x2fe   : > { %2216 = vtanh.f32 %v876_v40  ;;  %v895_v52 = vadd.f32 1.0, %v2213_v44  ;;  %v1105_v40 = vld [vmem:[%s3856_s2 + $0x78] sm:$0xff] }
 0x2ff   : > { %2218 = vrcp.f32 %v888_v43  ;;  %v1099_v43 = vld [vmem:[%s3856_s2 + $0x48] sm:$0xff]  ;;  %v1101_v44 = vld [vmem:[%s3856_s2 + $0x58] sm:$0xff] }
 0x300   : > { %2220 = vrcp.f32 %v895_v52  ;;  %v1097_v52 = vld [vmem:[%s3856_s2 + $0x38] sm:$0xff] }
 0x30a   : > { %v2215_v46 = vpop.eup %2214 }
 0x30b   : > { %v2217_v48 = vpop.eup %2216 }
 0x30c   : > { %v2219_v50 = vpop.eup %2218  ;;  %v899_v10 = vmul.f32 %v2217_v48, %v2215_v46  ;;  %v1098_v46 = vld [vmem:[%s3856_s2 + $0x40] sm:$0xff]  ;;  %v1100_v48 = vld [vmem:[%s3856_s2 + $0x50] sm:$0xff] }
 0x30d   : > { %v898_v45 = vmul.f32 %v2219_v50, %v2898_v47  ;;  %v2221_v61 = vpop.eup %2220  ;;  %v1144_v47 = vld [vmem:[%s3856_s2 + $0x1b0] sm:$0xff]  ;;  %v1095_v50 = vld [vmem:[%s3856_s2 + $0x28] sm:$0xff] }
 0x30f   : > { %v2980_v49 = vadd.f32 %v899_v10, %v898_v45  ;;  %v1094_v10 = vld [vmem:[%s3856_s2 + $0x20] sm:$0xff]  ;;  %v1096_v45 = vld [vmem:[%s3856_s2 + $0x30] sm:$0xff] }
 0x311   : > { %2222 = vtanh.f32 %v2980_v49 }
 0x31e   : > { %v2223_v1 = vpop.eup %2222 }
 0x31f   : > { %v2983_v5 = vmul.f32 %v2223_v1, %v2221_v61  ;;  %v1091_v61 = vld [vmem:[%s3856_s2 + $0x8] sm:$0xff]  ;;  %v1093_v1 = vld [vmem:[%s3856_s2 + $0x18] sm:$0xff] }
 0x321   : > { %977 = vmatmul.mubr.f32.vlgmr.msra.gmra.mxu0 %v2983_v5  ;;  %1048 = vmatmul.mubr.f32.vlgmr.msra.gmra.mxu1 %v2983_v5 }
 0x322   : > { %1177 = vmatpush1.msra.mxu0 %v1150_v53  ;;  %1266 = vmatpush1.msra.mxu1 %v1152_v63  ;;  %v1090_v53 = vld [vmem:[%s3856_s2] sm:$0xff]  ;;  %v1092_v63 = vld [vmem:[%s3856_s2 + $0x10] sm:$0xff] }
 0x323   : > { %1178 = vmatprep.subr.mxu0 %v1147_v62  ;;  %1267 = vmatprep.subr.mxu1 %v1149_v55  ;;  %v4018_v62 = vld [vmem:[#allocation27_spill] sm:$0xff]  ;;  %v3190_v55 = vld [vmem:[%s3857_s3 + $0x1e8] sm:$0xff] }
 0x324   : > { %1179 = vmatpush1.msra.mxu0 %v1146_v57  ;;  %1268 = vmatpush1.msra.mxu1 %v1148_v0  ;;  %4019 = vst [vmem:[#allocation7_spill] sm:$0xff] %v3190_v55  ;;  %v3207_v57 = vld [vmem:[%s3857_s3 + $0x1f0] sm:$0xff]  ;;  %v3214_v0 = vld [vmem:[%s3857_s3 + $0x1c8] sm:$0xff] }
 0x325   : > { %1180 = vmatprep.subr.mxu0 %v1143_v59  ;;  %1269 = vmatprep.subr.mxu1 %v1145_v58  ;;  %v3219_v59 = vld [vmem:[%s3857_s3 + $0x1d8] sm:$0xff]  ;;  %v3226_v58 = vld [vmem:[%s3857_s3 + $0x1c0] sm:$0xff] }
 0x326   : > { %1181 = vmatpush1.msra.mxu0 %v1142_v60  ;;  %1270 = vmatpush1.msra.mxu1 %v1144_v47  ;;  %v3231_v60 = vld [vmem:[%s3857_s3 + $0x1d0] sm:$0xff]  ;;  %v3238_v47 = vld [vmem:[%s3857_s3 + $0x1a8] sm:$0xff] }
 0x327   : > { %1182 = vmatprep.subr.mxu0 %v1139_v54  ;;  %1271 = vmatprep.subr.mxu1 %v1141_v56  ;;  %v3243_v54 = vld [vmem:[%s3857_s3 + $0x1b8] sm:$0xff]  ;;  %v3250_v56 = vld [vmem:[%s3857_s3 + $0x1a0] sm:$0xff] }
 0x328   : > { %1183 = vmatpush1.msra.mxu0 %v1138_v2  ;;  %1272 = vmatpush1.msra.mxu1 %v1140_v3  ;;  %v3255_v2 = vld [vmem:[%s3857_s3 + $0x1b0] sm:$0xff]  ;;  %v3262_v3 = vld [vmem:[%s3857_s3 + $0x188] sm:$0xff] }
 0x329   : > { %1184 = vmatprep.subr.mxu0 %v1135_v4  ;;  %1273 = vmatprep.subr.mxu1 %v1137_v6  ;;  %v3267_v4 = vld [vmem:[%s3857_s3 + $0x198] sm:$0xff]  ;;  %v3274_v6 = vld [vmem:[%s3857_s3 + $0x180] sm:$0xff] }
 0x32a   : > { %1185 = vmatpush1.msra.mxu0 %v1134_v7  ;;  %1274 = vmatpush1.msra.mxu1 %v1136_v8  ;;  %v3279_v7 = vld [vmem:[%s3857_s3 + $0x190] sm:$0xff]  ;;  %v3286_v8 = vld [vmem:[%s3857_s3 + $0x168] sm:$0xff] }
 0x32b   : > { %1186 = vmatprep.subr.mxu0 %v1131_v9  ;;  %1275 = vmatprep.subr.mxu1 %v1133_v11  ;;  %v3291_v9 = vld [vmem:[%s3857_s3 + $0x178] sm:$0xff]  ;;  %v3298_v11 = vld [vmem:[%s3857_s3 + $0x160] sm:$0xff] }
 0x32c   : > { %1187 = vmatpush1.msra.mxu0 %v1130_v12  ;;  %1276 = vmatpush1.msra.mxu1 %v1132_v13  ;;  %v3303_v12 = vld [vmem:[%s3857_s3 + $0x170] sm:$0xff]  ;;  %v3310_v13 = vld [vmem:[%s3857_s3 + $0x148] sm:$0xff] }
 0x32d   : > { %1188 = vmatprep.subr.mxu0 %v1127_v14  ;;  %1277 = vmatprep.subr.mxu1 %v1129_v15  ;;  %v3315_v14 = vld [vmem:[%s3857_s3 + $0x158] sm:$0xff]  ;;  %v3322_v15 = vld [vmem:[%s3857_s3 + $0x140] sm:$0xff] }
 0x32e   : > { %1189 = vmatpush1.msra.mxu0 %v1126_v16  ;;  %1278 = vmatpush1.msra.mxu1 %v1128_v17  ;;  %v3327_v16 = vld [vmem:[%s3857_s3 + $0x150] sm:$0xff]  ;;  %v3334_v17 = vld [vmem:[%s3857_s3 + $0x128] sm:$0xff] }
 0x32f   : > { %1190 = vmatprep.subr.mxu0 %v1123_v18  ;;  %1279 = vmatprep.subr.mxu1 %v1125_v19  ;;  %v3339_v18 = vld [vmem:[%s3857_s3 + $0x138] sm:$0xff]  ;;  %v3346_v19 = vld [vmem:[%s3857_s3 + $0x120] sm:$0xff] }
 0x330   : > { %1191 = vmatpush1.msra.mxu0 %v1122_v20  ;;  %1280 = vmatpush1.msra.mxu1 %v1124_v21  ;;  %v3351_v20 = vld [vmem:[%s3857_s3 + $0x130] sm:$0xff]  ;;  %v3358_v21 = vld [vmem:[%s3857_s3 + $0x108] sm:$0xff] }
 0x331   : > { %1192 = vmatprep.subr.mxu0 %v1119_v23  ;;  %1281 = vmatprep.subr.mxu1 %v1121_v24  ;;  %v3363_v23 = vld [vmem:[%s3857_s3 + $0x118] sm:$0xff]  ;;  %v3368_v24 = vld [vmem:[%s3857_s3 + $0x100] sm:$0xff] }
 0x332   : > { %1193 = vmatpush1.msra.mxu0 %v1118_v25  ;;  %1282 = vmatpush1.msra.mxu1 %v1120_v26  ;;  %v3375_v25 = vld [vmem:[%s3857_s3 + $0x110] sm:$0xff]  ;;  %v3380_v26 = vld [vmem:[%s3857_s3 + $0xe8] sm:$0xff] }
 0x333   : > { %1194 = vmatprep.subr.mxu0 %v1115_v27  ;;  %1283 = vmatprep.subr.mxu1 %v1117_v28  ;;  %v3385_v27 = vld [vmem:[%s3857_s3 + $0xf8] sm:$0xff]  ;;  %v3392_v28 = vld [vmem:[%s3857_s3 + $0xe0] sm:$0xff] }
 0x334   : > { %1195 = vmatpush1.msra.mxu0 %v1114_v29  ;;  %1284 = vmatpush1.msra.mxu1 %v1116_v30  ;;  %v3397_v29 = vld [vmem:[%s3857_s3 + $0xf0] sm:$0xff]  ;;  %v3402_v30 = vld [vmem:[%s3857_s3 + $0xc8] sm:$0xff] }
 0x335   : > { %1196 = vmatprep.subr.mxu0 %v1111_v31  ;;  %1285 = vmatprep.subr.mxu1 %v1113_v32  ;;  %v3409_v31 = vld [vmem:[%s3857_s3 + $0xd8] sm:$0xff]  ;;  %v3414_v32 = vld [vmem:[%s3857_s3 + $0xc0] sm:$0xff] }
 0x336   : > { %1197 = vmatpush1.msra.mxu0 %v1110_v33  ;;  %1286 = vmatpush1.msra.mxu1 %v1112_v34  ;;  %v3419_v33 = vld [vmem:[%s3857_s3 + $0xd0] sm:$0xff]  ;;  %v3426_v34 = vld [vmem:[%s3857_s3 + $0xa8] sm:$0xff] }
 0x337   : > { %1198 = vmatprep.subr.mxu0 %v1107_v35  ;;  %1287 = vmatprep.subr.mxu1 %v1109_v36  ;;  %v3431_v35 = vld [vmem:[%s3857_s3 + $0xb8] sm:$0xff]  ;;  %v3438_v36 = vld [vmem:[%s3857_s3 + $0xa0] sm:$0xff] }
 0x338   : > { %1199 = vmatpush1.msra.mxu0 %v1106_v37  ;;  %1288 = vmatpush1.msra.mxu1 %v1108_v38  ;;  %v3443_v37 = vld [vmem:[%s3857_s3 + $0xb0] sm:$0xff]  ;;  %v3450_v38 = vld [vmem:[%s3857_s3 + $0x88] sm:$0xff] }
 0x339   : > { %1200 = vmatprep.subr.mxu0 %v1103_v39  ;;  %1289 = vmatprep.subr.mxu1 %v1105_v40  ;;  %4021 = vst [vmem:[#allocation9_spill] sm:$0xff] %v3443_v37  ;;  %4022 = vst [vmem:[#allocation15_spill] sm:$0xff] %v3450_v38  ;;  %v3455_v39 = vld [vmem:[%s3857_s3 + $0x98] sm:$0xff]  ;;  %v3462_v40 = vld [vmem:[%s3857_s3 + $0x80] sm:$0xff] }
 0x33a   : > { %1201 = vmatpush1.msra.mxu0 %v1102_v41  ;;  %1290 = vmatpush1.msra.mxu1 %v1104_v42  ;;  %4023 = vst [vmem:[#allocation10_spill] sm:$0xff] %v3455_v39  ;;  %4024 = vst [vmem:[#allocation17_spill] sm:$0xff] %v3462_v40  ;;  %v3467_v41 = vld [vmem:[%s3857_s3 + $0x90] sm:$0xff]  ;;  %v3474_v42 = vld [vmem:[%s3857_s3 + $0x68] sm:$0xff] }
 0x33b   : > { %1202 = vmatprep.subr.mxu0 %v1099_v43  ;;  %1291 = vmatprep.subr.mxu1 %v1101_v44  ;;  %4025 = vst [vmem:[#allocation11_spill] sm:$0xff] %v3467_v41  ;;  %4026 = vst [vmem:[#allocation19_spill] sm:$0xff] %v3474_v42  ;;  %v3479_v43 = vld [vmem:[%s3857_s3 + $0x78] sm:$0xff]  ;;  %v3486_v44 = vld [vmem:[%s3857_s3 + $0x60] sm:$0xff] }
 0x33c   : > { %1203 = vmatpush1.msra.mxu0 %v1098_v46  ;;  %1292 = vmatpush1.msra.mxu1 %v1100_v48  ;;  %4027 = vst [vmem:[#allocation12_spill] sm:$0xff] %v3479_v43  ;;  %4028 = vst [vmem:[#allocation21_spill] sm:$0xff] %v3486_v44  ;;  %v3491_v46 = vld [vmem:[%s3857_s3 + $0x70] sm:$0xff]  ;;  %v3498_v48 = vld [vmem:[%s3857_s3 + $0x48] sm:$0xff] }
 0x33d   : > { %1204 = vmatprep.subr.mxu0 %v1095_v50  ;;  %1293 = vmatprep.subr.mxu1 %v1097_v52  ;;  %4029 = vst [vmem:[#allocation13_spill] sm:$0xff] %v3491_v46  ;;  %4030 = vst [vmem:[#allocation22_spill] sm:$0xff] %v3498_v48  ;;  %v3503_v50 = vld [vmem:[%s3857_s3 + $0x58] sm:$0xff]  ;;  %v3510_v52 = vld [vmem:[%s3857_s3 + $0x40] sm:$0xff] }
 0x33e   : > { %1205 = vmatpush1.msra.mxu0 %v1094_v10  ;;  %1294 = vmatpush1.msra.mxu1 %v1096_v45  ;;  %4031 = vst [vmem:[#allocation14_spill] sm:$0xff] %v3503_v50  ;;  %4032 = vst [vmem:[#allocation23_spill] sm:$0xff] %v3510_v52  ;;  %v3515_v10 = vld [vmem:[%s3857_s3 + $0x50] sm:$0xff]  ;;  %v3524_v45 = vld [vmem:[%s3857_s3 + $0x28] sm:$0xff] }
 0x33f   : > { %1206 = vmatprep.subr.mxu0 %v1091_v61  ;;  %1295 = vmatprep.subr.mxu1 %v1093_v1  ;;  %4033 = vst [vmem:[#allocation16_spill] sm:$0xff] %v3515_v10  ;;  %4034 = vst [vmem:[#allocation24_spill] sm:$0xff] %v3524_v45  ;;  %v3529_v61 = vld [vmem:[%s3857_s3 + $0x38] sm:$0xff]  ;;  %v3534_v1 = vld [vmem:[%s3857_s3 + $0x20] sm:$0xff] }
 0x340   : > { %1207 = vmatpush1.msra.mxu0 %v1090_v53  ;;  %1240 = vmatprep.mubr.f32.mxu0 %v4017_v22  ;;  %4035 = vst [vmem:[#allocation18_spill] sm:$0xff] %v3529_v61  ;;  %4036 = vst [vmem:[#allocation25_spill] sm:$0xff] %v3534_v1  ;;  %v3541_v53 = vld [vmem:[%s3857_s3 + $0x30] sm:$0xff] }
 0x341   : > { %1296 = vmatpush1.msra.mxu1 %v1092_v63  ;;  %1329 = vmatprep.mubr.f32.mxu1 %v4017_v22  ;;  %4037 = vst [vmem:[#allocation20_spill] sm:$0xff] %v3541_v53  ;;  %v3546_v63 = vld [vmem:[%s3857_s3 + $0x8] sm:$0xff] }
 0x342   : > { %1241 = vmatmul.mubr.f32.vlgmr.msra.gmra.mxu0 %v4018_v62  ;;  %1330 = vmatmul.mubr.f32.vlgmr.msra.gmra.mxu1 %v4018_v62  ;;  %4038 = vst [vmem:[#allocation26_spill] sm:$0xff] %v3546_v63  ;;  %v3551_v62 = vld [vmem:[%s3857_s3 + $0x18] sm:$0xff] }
 0x343   : > { %1246 = vmatprep.mubr.f32.mxu0 %v4017_v22  ;;  %1335 = vmatprep.mubr.f32.mxu1 %v4017_v22  ;;  %4039 = vst [vmem:[#allocation27_spill] sm:$0xff] %v3551_v62 }
 0x344   : > { %1355 = vmatprep.subr.mxu0 %v3190_v55 }
 0x346   : > { %1247 = vmatmul.mubr.f32.gmra.mxu0 %v2901_v51  ;;  %1336 = vmatmul.mubr.f32.gmra.mxu1 %v2901_v51  ;;  %v3195_v51 = vld [vmem:[%s3857_s3 + $0x1f8] sm:$0xff] }
 0x347   : > { %1252 = vmatprep.mubr.f32.mxu0 %v4017_v22  ;;  %1341 = vmatprep.mubr.f32.mxu1 %v4017_v22  ;;  %4020 = vst [vmem:[#allocation8_spill] sm:$0xff] %v3195_v51 }
 0x348   : > { %1426 = vmatprep.subr.mxu1 %v3195_v51 }
 0x349   : > { %1427 = vmatpush1.msra.mxu1 %v3207_v57 }
 0x34a   : > { %1253 = vmatmul.mubr.f32.gmra.mxu0 %v2983_v5  ;;  %1342 = vmatmul.mubr.f32.gmra.mxu1 %v2983_v5  ;;  %v3202_v5 = vld [vmem:[%s3857_s3 + $0x1e0] sm:$0xff] }
 0x34b   : > { %1258 = vmatprep.mubr.f32.mxu0 %v4017_v22  ;;  %1347 = vmatprep.mubr.f32.mxu1 %v4017_v22 }
 0x34c   : > { %1356 = vmatpush1.msra.mxu0 %v3202_v5  ;;  %1428 = vmatprep.subr.mxu1 %v3219_v59 }
 0x34d   : > { %1357 = vmatprep.subr.mxu0 %v3214_v0  ;;  %1429 = vmatpush1.msra.mxu1 %v3231_v60 }
 0x34e   : > { %1358 = vmatpush1.msra.mxu0 %v3226_v58  ;;  %1430 = vmatprep.subr.mxu1 %v3243_v54 }
 0x34f   : > { %1359 = vmatprep.subr.mxu0 %v3238_v47  ;;  %1431 = vmatpush1.msra.mxu1 %v3255_v2 }
 0x350   : > { %1360 = vmatpush1.msra.mxu0 %v3250_v56  ;;  %1432 = vmatprep.subr.mxu1 %v3267_v4 }
 0x351   : > { %1361 = vmatprep.subr.mxu0 %v3262_v3  ;;  %1433 = vmatpush1.msra.mxu1 %v3279_v7 }
 0x352   : > { %1362 = vmatpush1.msra.mxu0 %v3274_v6  ;;  %1434 = vmatprep.subr.mxu1 %v3291_v9 }
 0x353   : > { %1363 = vmatprep.subr.mxu0 %v3286_v8  ;;  %1435 = vmatpush1.msra.mxu1 %v3303_v12 }
 0x354   : > { %1364 = vmatpush1.msra.mxu0 %v3298_v11  ;;  %1436 = vmatprep.subr.mxu1 %v3315_v14 }
 0x355   : > { %1365 = vmatprep.subr.mxu0 %v3310_v13  ;;  %1437 = vmatpush1.msra.mxu1 %v3327_v16 }
 0x356   : > { %1366 = vmatpush1.msra.mxu0 %v3322_v15  ;;  %1438 = vmatprep.subr.mxu1 %v3339_v18 }
 0x357   : > { %1367 = vmatprep.subr.mxu0 %v3334_v17  ;;  %1439 = vmatpush1.msra.mxu1 %v3351_v20 }
 0x358   : > { %1368 = vmatpush1.msra.mxu0 %v3346_v19  ;;  %1440 = vmatprep.subr.mxu1 %v3363_v23 }
 0x359   : > { %1369 = vmatprep.subr.mxu0 %v3358_v21  ;;  %1441 = vmatpush1.msra.mxu1 %v3375_v25 }
 0x35a   : > { %1370 = vmatpush1.msra.mxu0 %v3368_v24  ;;  %1442 = vmatprep.subr.mxu1 %v3385_v27 }
 0x35b   : > { %1371 = vmatprep.subr.mxu0 %v3380_v26  ;;  %1443 = vmatpush1.msra.mxu1 %v3397_v29 }
 0x35c   : > { %1372 = vmatpush1.msra.mxu0 %v3392_v28  ;;  %1444 = vmatprep.subr.mxu1 %v3409_v31 }
 0x35d   : > { %1373 = vmatprep.subr.mxu0 %v3402_v30  ;;  %1445 = vmatpush1.msra.mxu1 %v3419_v33 }
 0x35e   : > { %1374 = vmatpush1.msra.mxu0 %v3414_v32  ;;  %1446 = vmatprep.subr.mxu1 %v3431_v35 }
 0x35f   : > { %1375 = vmatprep.subr.mxu0 %v3426_v34  ;;  %1447 = vmatpush1.msra.mxu1 %v3443_v37 }
 0x360   : > { %1376 = vmatpush1.msra.mxu0 %v3438_v36  ;;  %1448 = vmatprep.subr.mxu1 %v3455_v39 }
 0x361   : > { %1377 = vmatprep.subr.mxu0 %v3450_v38  ;;  %1449 = vmatpush1.msra.mxu1 %v3467_v41 }
 0x362   : > { %1378 = vmatpush1.msra.mxu0 %v3462_v40  ;;  %1450 = vmatprep.subr.mxu1 %v3479_v43 }
 0x363   : > { %1379 = vmatprep.subr.mxu0 %v3474_v42  ;;  %1451 = vmatpush1.msra.mxu1 %v3491_v46 }
 0x364   : > { %1380 = vmatpush1.msra.mxu0 %v3486_v44  ;;  %1452 = vmatprep.subr.mxu1 %v3503_v50  ;;  %v2142_v50 = vld [vmem:[%s2355_s25 + $0x68] sm:$0xff]  ;;  %v2144_v44 = vld [vmem:[%s2355_s25 + $0x78] sm:$0xff] }
 0x365   : > { %1381 = vmatprep.subr.mxu0 %v3498_v48  ;;  %1453 = vmatpush1.msra.mxu1 %v3515_v10  ;;  %v3558_v10 = vld [vmem:[%s3857_s3] sm:$0xff] }
 0x366   : > { %1382 = vmatpush1.msra.mxu0 %v3510_v52  ;;  %1454 = vmatprep.subr.mxu1 %v3529_v61  ;;  %4040 = vst [vmem:[#allocation28_spill] sm:$0xff] %v3558_v10  ;;  %v3563_v52 = vld [vmem:[%s3857_s3 + $0x10] sm:$0xff]  ;;  %v2141_v61 = vld [vmem:[%s2355_s25 + $0x60] sm:$0xff] }
 0x367   : > { %1383 = vmatprep.subr.mxu0 %v3524_v45  ;;  %4041 = vst [vmem:[#allocation29_spill] sm:$0xff] %v3563_v52  ;;  %1455 = vmatpush1.msra.mxu1 %v3541_v53 }
 0x368   : > { %1384 = vmatpush1.msra.mxu0 %v3534_v1  ;;  %1456 = vmatprep.subr.mxu1 %v3551_v62 }
 0x369   : > { %1385 = vmatprep.subr.mxu0 %v3546_v63  ;;  %1457 = vmatpush1.msra.mxu1 %v3563_v52  ;;  %v2143_v52 = vld [vmem:[%s2355_s25 + $0x70] sm:$0xff] }
 0x36a   : > { %1386 = vmatpush1.msra.mxu0 %v3558_v10  ;;  %1601 = vmatprep.subr.mxu1 %v3195_v51 }
 0x36b   : > { %1530 = vmatprep.subr.mxu0 %v3190_v55 }
 0x3e1   : > { %v978_v45 = vpop.f32.mrf.mxu0  ;;  %v1049_v63 = vpop.f32.mrf.mxu1 }
 0x3e2   : > { %v1054_v1 = vadd.f32 %v2141_v61, %v978_v45  ;;  %v1056_v41 = vadd.f32 %v2143_v52, %v1049_v63  ;;  %v4048_v63 = vld [vmem:[#allocation13_spill] sm:$0xff] }
 0x3e3   : > { %v980_v48 = vpop.f32.mrf.mxu0  ;;  %v1051_v10 = vpop.f32.mrf.mxu1 }
 0x3e4   : > { %v2145_v53 = vmul.f32 -1.442695, %v1054_v1  ;;  %v1055_v46 = vadd.f32 %v2142_v50, %v980_v48  ;;  %v1057_v43 = vadd.f32 %v2144_v44, %v1051_v10  ;;  %v4047_v10 = vld [vmem:[#allocation21_spill] sm:$0xff] }
 0x3e6   : > { %2224 = vpow2.f32 %v2145_v53  ;;  %v2146_v62 = vmul.f32 -1.442695, %v1055_v46  ;;  %v2147_v42 = vmul.f32 -1.442695, %v1057_v43 }
 0x3e8   : > { %2226 = vpow2.f32 %v2146_v62  ;;  %v4049_v62 = vld [vmem:[#allocation22_spill] sm:$0xff] }
 0x3e9   : > { %2228 = vpow2.f32 %v2147_v42  ;;  %v4046_v42 = vld [vmem:[#allocation12_spill] sm:$0xff] }
 0x3f3   : > { %v2225_v55 = vpop.eup %2224 }
 0x3f4   : > { %v1062_v40 = vadd.f32 1.0, %v2225_v55 }
 0x3f5   : > { %v2227_v51 = vpop.eup %2226 }
 0x3f6   : > { %2230 = vrcp.f32 %v1062_v40  ;;  %v1068_v39 = vadd.f32 1.0, %v2227_v51  ;;  %v2229_v45 = vpop.eup %2228  ;;  %v1354_v51 = vld [vmem:[#allocation4] sm:$0xff]  ;;  %v4044_v40 = vld [vmem:[#allocation11_spill] sm:$0xff] }
 0x3f7   : > { %2232 = vtanh.f32 %v1056_v41  ;;  %v1075_v46 = vadd.f32 1.0, %v2229_v45  ;;  %v4045_v41 = vld [vmem:[#allocation19_spill] sm:$0xff]  ;;  %v4050_v45 = vld [vmem:[#allocation14_spill] sm:$0xff] }
 0x3f8   : > { %2234 = vrcp.f32 %v1068_v39  ;;  %v4043_v39 = vld [vmem:[#allocation17_spill] sm:$0xff] }
 0x3f9   : > { %2236 = vrcp.f32 %v1075_v46  ;;  %v4054_v46 = vld [vmem:[#allocation18_spill] sm:$0xff] }
 0x403   : > { %v2231_v48 = vpop.eup %2230 }
 0x404   : > { %v2233_v50 = vpop.eup %2232 }
 0x405   : > { %v2235_v61 = vpop.eup %2234  ;;  %v1079_v1 = vmul.f32 %v2233_v50, %v2231_v48  ;;  %v4051_v48 = vld [vmem:[#allocation23_spill] sm:$0xff]  ;;  %v4052_v50 = vld [vmem:[#allocation16_spill] sm:$0xff] }
 0x406   : > { %v1078_v53 = vmul.f32 %v2235_v61, %v2980_v49  ;;  %v2237_v43 = vpop.eup %2236  ;;  %v4042_v49 = vld [vmem:[#allocation10_spill] sm:$0xff]  ;;  %v4053_v61 = vld [vmem:[#allocation24_spill] sm:$0xff] }
 0x408   : > { %v1080_v44 = vadd.f32 %v1079_v1, %v1078_v53  ;;  %v4055_v1 = vld [vmem:[#allocation25_spill] sm:$0xff]  ;;  %v4056_v53 = vld [vmem:[#allocation20_spill] sm:$0xff] }
 0x40a   : > { %2238 = vtanh.f32 %v1080_v44  ;;  %1084 = vst [vmem:[#allocation3] sm:$0xff] %v1080_v44  ;;  %v4057_v44 = vld [vmem:[#allocation26_spill] sm:$0xff] }
 0x417   : > { %v2239_v55 = vpop.eup %2238 }
 0x418   : > { %v1082_v52 = vmul.f32 %v2239_v55, %v2237_v43  ;;  %v4058_v43 = vld [vmem:[#allocation27_spill] sm:$0xff]  ;;  %v4059_v55 = vld [vmem:[#allocation28_spill] sm:$0xff] }
 0x41a   : > { %1083 = vst [vmem:[#allocation2] sm:$0xff] %v1082_v52  ;;  %1259 = vmatmul.mubr.f32.gmra.mxu0 %v1082_v52  ;;  %1348 = vmatmul.mubr.f32.gmra.mxu1 %v1082_v52  ;;  %v4060_v52 = vld [vmem:[#allocation29_spill] sm:$0xff] }
 0x41b   : > { %1419 = vmatprep.mubr.f32.mxu0 %v4017_v22  ;;  %1490 = vmatprep.mubr.f32.mxu1 %v4017_v22 }
 0x41e   : > { %1420 = vmatmul.mubr.f32.vlgmr.msra.gmra.mxu0 %v1354_v51  ;;  %1491 = vmatmul.mubr.f32.vlgmr.msra.gmra.mxu1 %v1354_v51  ;;  %v4061_v51 = vld [vmem:[#allocation7_spill] sm:$0xff] }
 0x41f   : > { %1531 = vmatpush1.msra.mxu0 %v3202_v5  ;;  %1602 = vmatpush1.msra.mxu1 %v3207_v57 }
 0x420   : > { %1532 = vmatprep.subr.mxu0 %v3214_v0  ;;  %1603 = vmatprep.subr.mxu1 %v3219_v59 }
 0x421   : > { %1533 = vmatpush1.msra.mxu0 %v3226_v58  ;;  %1604 = vmatpush1.msra.mxu1 %v3231_v60 }
 0x422   : > { %1534 = vmatprep.subr.mxu0 %v3238_v47  ;;  %1605 = vmatprep.subr.mxu1 %v3243_v54 }
 0x423   : > { %1535 = vmatpush1.msra.mxu0 %v3250_v56  ;;  %1606 = vmatpush1.msra.mxu1 %v3255_v2 }
 0x424   : > { %1536 = vmatprep.subr.mxu0 %v3262_v3  ;;  %1607 = vmatprep.subr.mxu1 %v3267_v4 }
 0x425   : > { %1537 = vmatpush1.msra.mxu0 %v3274_v6  ;;  %1608 = vmatpush1.msra.mxu1 %v3279_v7 }
 0x426   : > { %1538 = vmatprep.subr.mxu0 %v3286_v8  ;;  %1609 = vmatprep.subr.mxu1 %v3291_v9 }
 0x427   : > { %1539 = vmatpush1.msra.mxu0 %v3298_v11  ;;  %1610 = vmatpush1.msra.mxu1 %v3303_v12 }
 0x428   : > { %1540 = vmatprep.subr.mxu0 %v3310_v13  ;;  %1611 = vmatprep.subr.mxu1 %v3315_v14 }
 0x429   : > { %1541 = vmatpush1.msra.mxu0 %v3322_v15  ;;  %1612 = vmatpush1.msra.mxu1 %v3327_v16 }
 0x42a   : > { %1542 = vmatprep.subr.mxu0 %v3334_v17  ;;  %1613 = vmatprep.subr.mxu1 %v3339_v18 }
 0x42b   : > { %1543 = vmatpush1.msra.mxu0 %v3346_v19  ;;  %1614 = vmatpush1.msra.mxu1 %v3351_v20 }
 0x42c   : > { %1544 = vmatprep.subr.mxu0 %v3358_v21  ;;  %1615 = vmatprep.subr.mxu1 %v3363_v23 }
 0x42d   : > { %1545 = vmatpush1.msra.mxu0 %v3368_v24  ;;  %1616 = vmatpush1.msra.mxu1 %v3375_v25 }
 0x42e   : > { %1546 = vmatprep.subr.mxu0 %v3380_v26  ;;  %1617 = vmatprep.subr.mxu1 %v3385_v27 }
 0x42f   : > { %1547 = vmatpush1.msra.mxu0 %v3392_v28  ;;  %1618 = vmatpush1.msra.mxu1 %v3397_v29 }
 0x430   : > { %1548 = vmatprep.subr.mxu0 %v3402_v30  ;;  %1619 = vmatprep.subr.mxu1 %v3409_v31 }
 0x431   : > { %1549 = vmatpush1.msra.mxu0 %v3414_v32  ;;  %1620 = vmatpush1.msra.mxu1 %v3419_v33 }
 0x432   : > { %1550 = vmatprep.subr.mxu0 %v3426_v34  ;;  %1621 = vmatprep.subr.mxu1 %v3431_v35 }
 0x433   : > { %1551 = vmatpush1.msra.mxu0 %v3438_v36  ;;  %1622 = vmatpush1.msra.mxu1 %v3443_v37 }
 0x434   : > { %1552 = vmatprep.subr.mxu0 %v3450_v38  ;;  %1623 = vmatprep.subr.mxu1 %v4042_v49 }
 0x435   : > { %1553 = vmatpush1.msra.mxu0 %v4043_v39  ;;  %1624 = vmatpush1.msra.mxu1 %v4044_v40 }
 0x436   : > { %1554 = vmatprep.subr.mxu0 %v4045_v41  ;;  %1625 = vmatprep.subr.mxu1 %v4046_v42 }
 0x437   : > { %1555 = vmatpush1.msra.mxu0 %v4047_v10  ;;  %1626 = vmatpush1.msra.mxu1 %v4048_v63 }
 0x438   : > { %1556 = vmatprep.subr.mxu0 %v4049_v62  ;;  %1627 = vmatprep.subr.mxu1 %v4050_v45 }
 0x439   : > { %1557 = vmatpush1.msra.mxu0 %v4051_v48  ;;  %1628 = vmatpush1.msra.mxu1 %v4052_v50 }
 0x43a   : > { %1558 = vmatprep.subr.mxu0 %v4053_v61  ;;  %1629 = vmatprep.subr.mxu1 %v4054_v46  ;;  %v4062_v61 = vld [vmem:[#allocation8_spill] sm:$0xff]  ;;  %v1242_v46 = vpop.f32.mrf.mxu0 }
 0x43b   : > { %1559 = vmatpush1.msra.mxu0 %v4055_v1  ;;  %1630 = vmatpush1.msra.mxu1 %v4056_v53  ;;  %v1331_v1 = vpop.f32.mrf.mxu1 }
 0x43c   : > { %1560 = vmatprep.subr.mxu0 %v4057_v44  ;;  %1631 = vmatprep.subr.mxu1 %v4058_v43  ;;  %v1244_v50 = vpop.f32.mrf.mxu0  ;;  %v1156_v44 = vlaneseq }
 0x43d   : > { %1561 = vmatpush1.msra.mxu0 %v4059_v55  ;;  %1594 = vmatprep.mubr.f32.mxu0 %v4017_v22  ;;  %v1333_v53 = vpop.f32.mrf.mxu1 }
 0x43e   : > { %1632 = vmatpush1.msra.mxu1 %v4060_v52  ;;  %1665 = vmatprep.mubr.f32.mxu1 %v4017_v22  ;;  %v3646_v48 = vpop.f32.mrf.mxu0  ;;  %v1157_v45 = vshrl.u32 %v1156_v44, 7 }
 0x43f   : > { %1706 = vmatprep.subr.mxu0 %v4061_v51  ;;  %1777 = vmatprep.subr.mxu1 %v4062_v61  ;;  %4063 = vst [vmem:[#allocation30_spill] sm:$0xff] %v3646_v48  ;;  %v3648_v43 = vpop.f32.mrf.mxu1  ;;  %v1154_v61 = vld [vmem:[%s3858_s4] sm:$0xf] }
 0x440   : > { %4064 = vst [vmem:[#allocation31_spill] sm:$0xff] %v3648_v43  ;;  %v3650_v55 = vpop.f32.mrf.mxu0  ;;  %v1158_v22 = vsub.s32 0, %v1157_v45  ;;  %v1162_v63 = vsub.s32 1, %v1157_v45 }
 0x441   : > { %4065 = vst [vmem:[#allocation32_spill] sm:$0xff] %v3650_v55  ;;  %v3652_v62 = vpop.f32.mrf.mxu1 }
 0x442   : > { %4066 = vst [vmem:[#allocation33_spill] sm:$0xff] %v3652_v62  ;;  %v3654_v52 = vpop.f32.mrf.mxu0  ;;  %v3663_v48 = vrot.slane %v1154_v61, %v1158_v22  ;;  %v3669_v44 = vrot.slane %v1154_v61, %v1162_v63  ;;  %v1170_v22 = vsub.s32 3, %v1157_v45 }
 0x443   : > { %4067 = vst [vmem:[#allocation34_spill] sm:$0xff] %v3654_v52  ;;  %v3656_v51 = vpop.f32.mrf.mxu1 }
 0x444   : > { %4068 = vst [vmem:[#allocation35_spill] sm:$0xff] %v3656_v51  ;;  %v3661_v10 = vpop.f32.mrf.mxu0  ;;  %4070 = vst [vmem:[#allocation37_spill] sm:$0xff] %v3663_v48  ;;  %v1243_v51 = vadd.f32 %v1242_v46, %v3663_v48  ;;  %v1245_v41 = vadd.f32 %v1244_v50, %v3669_v44  ;;  %v3679_v38 = vrot.slane %v1154_v61, %v1170_v22 }
 0x445   : > { %4069 = vst [vmem:[#allocation36_spill] sm:$0xff] %v3661_v10  ;;  %v3665_v43 = vpop.f32.mrf.mxu1  ;;  %4073 = vst [vmem:[#allocation40_spill] sm:$0xff] %v3669_v44 }
 0x446   : > { %4071 = vst [vmem:[#allocation38_spill] sm:$0xff] %v3665_v43  ;;  %v1334_v46 = vadd.f32 %v1333_v53, %v3679_v38 }
 0x4da   : > { %v3667_v55 = vpop.f32.mrf.mxu0  ;;  %v3671_v62 = vpop.f32.mrf.mxu1 }
 0x4db   : > { %4072 = vst [vmem:[#allocation39_spill] sm:$0xff] %v3667_v55  ;;  %4074 = vst [vmem:[#allocation41_spill] sm:$0xff] %v3671_v62  ;;  %v1166_v62 = vsub.s32 2, %v1157_v45 }
 0x4dc   : > { %v3673_v52 = vpop.f32.mrf.mxu0  ;;  %v3677_v40 = vpop.f32.mrf.mxu1 }
 0x4dd   : > { %4075 = vst [vmem:[#allocation42_spill] sm:$0xff] %v3673_v52  ;;  %4076 = vst [vmem:[#allocation43_spill] sm:$0xff] %v3677_v40  ;;  %v3682_v48 = vrot.slane %v1154_v61, %v1166_v62 }
 0x4de   : > { %v1421_v42 = vpop.f32.mrf.mxu0  ;;  %v1492_v55 = vpop.f32.mrf.mxu1 }
 0x4df   : > { %v1497_v10 = vadd.f32 %v1421_v42, %v1243_v51  ;;  %v1332_v40 = vadd.f32 %v1331_v1, %v3682_v48 }
 0x4e0   : > { %v1423_v39 = vpop.f32.mrf.mxu0  ;;  %v1494_v52 = vpop.f32.mrf.mxu1 }
 0x4e1   : > { %v2148_v49 = vmul.f32 -1.442695, %v1497_v10  ;;  %v1498_v43 = vadd.f32 %v1423_v39, %v1245_v41  ;;  %v1500_v50 = vadd.f32 %v1494_v52, %v1334_v46  ;;  %v1499_v44 = vadd.f32 %v1492_v55, %v1332_v40  ;;  %v4078_v46 = vld [vmem:[#allocation10_spill] sm:$0xff] }
 0x4e3   : > { %2240 = vpow2.f32 %v2148_v49  ;;  %v2149_v63 = vmul.f32 -1.442695, %v1498_v43  ;;  %v2150_v42 = vmul.f32 -1.442695, %v1500_v50  ;;  %v1501_v43 = vld [vmem:[#allocation5] sm:$0xff]  ;;  %v4079_v50 = vld [vmem:[#allocation17_spill] sm:$0xff] }
 0x4e5   : > { %2242 = vpow2.f32 %v2149_v63 }
 0x4e6   : > { %2244 = vpow2.f32 %v2150_v42  ;;  %v4080_v42 = vld [vmem:[#allocation11_spill] sm:$0xff] }
 0x4f0   : > { %v2241_v51 = vpop.eup %2240 }
 0x4f1   : > { %v1505_v10 = vadd.f32 1.0, %v2241_v51  ;;  %v4081_v51 = vld [vmem:[#allocation19_spill] sm:$0xff] }
 0x4f2   : > { %v2243_v39 = vpop.eup %2242 }
 0x4f3   : > { %2246 = vrcp.f32 %v1505_v10  ;;  %v1511_v49 = vadd.f32 1.0, %v2243_v39  ;;  %v2245_v41 = vpop.eup %2244  ;;  %v4082_v10 = vld [vmem:[#allocation12_spill] sm:$0xff]  ;;  %v4083_v39 = vld [vmem:[#allocation21_spill] sm:$0xff] }
 0x4f4   : > { %2248 = vtanh.f32 %v1499_v44  ;;  %v1518_v61 = vadd.f32 1.0, %v2245_v41  ;;  %v4077_v44 = vld [vmem:[#allocation15_spill] sm:$0xff]  ;;  %v4085_v41 = vld [vmem:[#allocation22_spill] sm:$0xff] }
 0x4f5   : > { %2250 = vrcp.f32 %v1511_v49  ;;  %v4084_v49 = vld [vmem:[#allocation13_spill] sm:$0xff] }
 0x4f6   : > { %2252 = vrcp.f32 %v1518_v61  ;;  %v4090_v61 = vld [vmem:[#allocation18_spill] sm:$0xff] }
 0x500   : > { %v2247_v45 = vpop.eup %2246 }
 0x501   : > { %v2249_v53 = vpop.eup %2248 }
 0x502   : > { %v2251_v62 = vpop.eup %2250  ;;  %v1522_v52 = vmul.f32 %v2249_v53, %v2247_v45  ;;  %v4086_v45 = vld [vmem:[#allocation14_spill] sm:$0xff]  ;;  %v4088_v53 = vld [vmem:[#allocation16_spill] sm:$0xff] }
 0x503   : > { %v1521_v22 = vmul.f32 %v2251_v62, %v1501_v43  ;;  %v2253_v40 = vpop.eup %2252  ;;  %v4087_v43 = vld [vmem:[#allocation23_spill] sm:$0xff]  ;;  %v4089_v62 = vld [vmem:[#allocation24_spill] sm:$0xff] }
 0x505   : > { %v3685_v1 = vadd.f32 %v1522_v52, %v1521_v22  ;;  %v4091_v52 = vld [vmem:[#allocation25_spill] sm:$0xff]  ;;  %v4092_v22 = vld [vmem:[#allocation20_spill] sm:$0xff] }
 0x507   : > { %2254 = vtanh.f32 %v3685_v1 }
 0x514   : > { %v2255_v55 = vpop.eup %2254 }
 0x515   : > { %v1525_v63 = vmul.f32 %v2255_v55, %v2253_v40  ;;  %v4093_v40 = vld [vmem:[#allocation26_spill] sm:$0xff]  ;;  %v4094_v55 = vld [vmem:[#allocation27_spill] sm:$0xff] }
 0x517   : > { %1528 = vst [vmem:[%s2360_s28] sm:$0xff] %v1525_v63  ;;  %1595 = vmatmul.mubr.f32.vlgmr.msra.gmra.mxu0 %v1525_v63  ;;  %1666 = vmatmul.mubr.f32.vlgmr.msra.gmra.mxu1 %v1525_v63  ;;  %v4095_v63 = vld [vmem:[#allocation28_spill] sm:$0xff] }
 0x518   : > { %1707 = vmatpush1.msra.mxu0 %v3202_v5  ;;  %1778 = vmatpush1.msra.mxu1 %v3207_v57 }
 0x519   : > { %1708 = vmatprep.subr.mxu0 %v3214_v0  ;;  %1779 = vmatprep.subr.mxu1 %v3219_v59 }
 0x51a   : > { %1709 = vmatpush1.msra.mxu0 %v3226_v58  ;;  %1780 = vmatpush1.msra.mxu1 %v3231_v60 }
 0x51b   : > { %1710 = vmatprep.subr.mxu0 %v3238_v47  ;;  %1781 = vmatprep.subr.mxu1 %v3243_v54 }
 0x51c   : > { %1711 = vmatpush1.msra.mxu0 %v3250_v56  ;;  %1782 = vmatpush1.msra.mxu1 %v3255_v2 }
 0x51d   : > { %1712 = vmatprep.subr.mxu0 %v3262_v3  ;;  %1783 = vmatprep.subr.mxu1 %v3267_v4 }
 0x51e   : > { %1713 = vmatpush1.msra.mxu0 %v3274_v6  ;;  %1784 = vmatpush1.msra.mxu1 %v3279_v7 }
 0x51f   : > { %1714 = vmatprep.subr.mxu0 %v3286_v8  ;;  %1785 = vmatprep.subr.mxu1 %v3291_v9 }
 0x520   : > { %1715 = vmatpush1.msra.mxu0 %v3298_v11  ;;  %1786 = vmatpush1.msra.mxu1 %v3303_v12 }
 0x521   : > { %1716 = vmatprep.subr.mxu0 %v3310_v13  ;;  %1787 = vmatprep.subr.mxu1 %v3315_v14 }
 0x522   : > { %1717 = vmatpush1.msra.mxu0 %v3322_v15  ;;  %1788 = vmatpush1.msra.mxu1 %v3327_v16 }
 0x523   : > { %1718 = vmatprep.subr.mxu0 %v3334_v17  ;;  %1789 = vmatprep.subr.mxu1 %v3339_v18 }
 0x524   : > { %1719 = vmatpush1.msra.mxu0 %v3346_v19  ;;  %1790 = vmatpush1.msra.mxu1 %v3351_v20 }
 0x525   : > { %1720 = vmatprep.subr.mxu0 %v3358_v21  ;;  %1791 = vmatprep.subr.mxu1 %v3363_v23 }
 0x526   : > { %1721 = vmatpush1.msra.mxu0 %v3368_v24  ;;  %1792 = vmatpush1.msra.mxu1 %v3375_v25 }
 0x527   : > { %1722 = vmatprep.subr.mxu0 %v3380_v26  ;;  %1793 = vmatprep.subr.mxu1 %v3385_v27 }
 0x528   : > { %1723 = vmatpush1.msra.mxu0 %v3392_v28  ;;  %1794 = vmatpush1.msra.mxu1 %v3397_v29 }
 0x529   : > { %1724 = vmatprep.subr.mxu0 %v3402_v30  ;;  %1795 = vmatprep.subr.mxu1 %v3409_v31 }
 0x52a   : > { %1725 = vmatpush1.msra.mxu0 %v3414_v32  ;;  %1796 = vmatpush1.msra.mxu1 %v3419_v33 }
 0x52b   : > { %1726 = vmatprep.subr.mxu0 %v3426_v34  ;;  %1797 = vmatprep.subr.mxu1 %v3431_v35 }
 0x52c   : > { %1727 = vmatpush1.msra.mxu0 %v3438_v36  ;;  %1798 = vmatpush1.msra.mxu1 %v3443_v37 }
 0x52d   : > { %1728 = vmatprep.subr.mxu0 %v4077_v44  ;;  %1799 = vmatprep.subr.mxu1 %v4078_v46  ;;  %v4105_v46 = vld [vmem:[#allocation31_spill] sm:$0xff] }
 0x52e   : > { %1729 = vmatpush1.msra.mxu0 %v4079_v50  ;;  %1800 = vmatpush1.msra.mxu1 %v4080_v42 }
 0x52f   : > { %1730 = vmatprep.subr.mxu0 %v4081_v51  ;;  %1801 = vmatprep.subr.mxu1 %v4082_v10 }
 0x530   : > { %1731 = vmatpush1.msra.mxu0 %v4083_v39  ;;  %1802 = vmatpush1.msra.mxu1 %v4084_v49  ;;  %v4102_v49 = vld [vmem:[#allocation40_spill] sm:$0xff] }
 0x531   : > { %1732 = vmatprep.subr.mxu0 %v4085_v41  ;;  %1803 = vmatprep.subr.mxu1 %v4086_v45  ;;  %v4096_v41 = vmov 0.0   ;;  %v4097_v45 = vld [vmem:[#allocation29_spill] sm:$0xff] }
 0x532   : > { %1733 = vmatpush1.msra.mxu0 %v4087_v43  ;;  %1804 = vmatpush1.msra.mxu1 %v4088_v53  ;;  %v4098_v53 = vld [vmem:[#allocation7_spill] sm:$0xff] }
 0x533   : > { %1734 = vmatprep.subr.mxu0 %v4089_v62  ;;  %1805 = vmatprep.subr.mxu1 %v4090_v61  ;;  %v4099_v62 = vld [vmem:[#allocation8_spill] sm:$0xff]  ;;  %v4100_v61 = vld [vmem:[#allocation37_spill] sm:$0xff] }
 0x534   : > { %1735 = vmatpush1.msra.mxu0 %v4091_v52  ;;  %1806 = vmatpush1.msra.mxu1 %v4092_v22  ;;  %v4101_v52 = vld [vmem:[#allocation30_spill] sm:$0xff] }
 0x535   : > { %1736 = vmatprep.subr.mxu0 %v4093_v40  ;;  %1807 = vmatprep.subr.mxu1 %v4094_v55  ;;  %v1249_v43 = vadd.f32 %v4101_v52, %v4100_v61  ;;  %v4103_v40 = vld [vmem:[#allocation32_spill] sm:$0xff]  ;;  %v1338_v52 = vadd.f32 %v4105_v46, %v3682_v48 }
 0x536   : > { %1737 = vmatpush1.msra.mxu0 %v4095_v63  ;;  %1770 = vmatprep.mubr.f32.mxu0 %v4096_v41  ;;  %v1251_v39 = vadd.f32 %v4103_v40, %v4102_v49 }
 0x537   : > { %1808 = vmatpush1.msra.mxu1 %v4097_v45  ;;  %1841 = vmatprep.mubr.f32.mxu1 %v4096_v41 }
 0x538   : > { %1882 = vmatprep.subr.mxu0 %v4098_v53  ;;  %1953 = vmatprep.subr.mxu1 %v4099_v62  ;;  %v4104_v53 = vld [vmem:[#allocation33_spill] sm:$0xff] }
 0x539   : > { %v1340_v50 = vadd.f32 %v4104_v53, %v3679_v38 }
 0x5d7   : > { %v1596_v22 = vpop.f32.mrf.mxu0  ;;  %v1667_v42 = vpop.f32.mrf.mxu1 }
 0x5d8   : > { %v1672_v55 = vadd.f32 %v1596_v22, %v1249_v43  ;;  %v1674_v61 = vadd.f32 %v1667_v42, %v1338_v52 }
 0x5d9   : > { %v1598_v10 = vpop.f32.mrf.mxu0  ;;  %v1669_v41 = vpop.f32.mrf.mxu1 }
 0x5da   : > { %v2151_v63 = vmul.f32 -1.442695, %v1672_v55  ;;  %v1673_v51 = vadd.f32 %v1598_v10, %v1251_v39  ;;  %v1675_v62 = vadd.f32 %v1669_v41, %v1340_v50 }
 0x5dc   : > { %2256 = vpow2.f32 %v2151_v63  ;;  %v2152_v45 = vmul.f32 -1.442695, %v1673_v51  ;;  %v2153_v44 = vmul.f32 -1.442695, %v1675_v62 }
 0x5de   : > { %2258 = vpow2.f32 %v2152_v45 }
 0x5df   : > { %2260 = vtanh.f32 %v1674_v61 }
 0x5e0   : > { %2262 = vpow2.f32 %v2153_v44 }
 0x5e9   : > { %v2257_v37 = vpop.eup %2256 }
 0x5ea   : > { %v1680_v40 = vadd.f32 1.0, %v2257_v37 }
 0x5eb   : > { %v2259_v43 = vpop.eup %2258 }
 0x5ec   : > { %2264 = vrcp.f32 %v1680_v40  ;;  %v1686_v10 = vadd.f32 1.0, %v2259_v43  ;;  %v2261_v51 = vpop.eup %2260 }
 0x5ed   : > { %v2263_v39 = vpop.eup %2262 }
 0x5ee   : > { %2266 = vrcp.f32 %v1686_v10  ;;  %v1693_v50 = vadd.f32 1.0, %v2263_v39 }
 0x5f0   : > { %2268 = vrcp.f32 %v1693_v50 }
 0x5f9   : > { %v2265_v45 = vpop.eup %2264 }
 0x5fa   : > { %v1697_v22 = vmul.f32 %v2265_v45, %v2261_v51 }
 0x5fb   : > { %v2267_v55 = vpop.eup %2266 }
 0x5fc   : > { %v1696_v41 = vmul.f32 %v2267_v55, %v3685_v1 }
 0x5fd   : > { %v2269_v37 = vpop.eup %2268 }
 0x5fe   : > { %v3764_v46 = vadd.f32 %v1697_v22, %v1696_v41 }
 0x600   : > { %2270 = vtanh.f32 %v3764_v46 }
 0x60d   : > { %v2271_v42 = vpop.eup %2270 }
 0x60e   : > { %v1700_v44 = vmul.f32 %v2271_v42, %v2269_v37  ;;  %v4133_v37 = vld [vmem:[#allocation39_spill] sm:$0xff] }
 0x610   : > { %2154 = vst [vmem:[%s2360_s28 + $0x8] sm:$0xff] %v1700_v44  ;;  %1771 = vmatmul.mubr.f32.vlgmr.msra.gmra.mxu0 %v1700_v44  ;;  %1842 = vmatmul.mubr.f32.vlgmr.msra.gmra.mxu1 %v1700_v44 }
 0x611   : > { %1883 = vmatpush1.msra.mxu0 %v3202_v5  ;;  %1954 = vmatpush1.msra.mxu1 %v3207_v57  ;;  %v4106_v5 = vld [vmem:[#allocation9_spill] sm:$0xff]  ;;  %v4107_v57 = vld [vmem:[#allocation15_spill] sm:$0xff] }
 0x612   : > { %1884 = vmatprep.subr.mxu0 %v3214_v0  ;;  %1955 = vmatprep.subr.mxu1 %v3219_v59  ;;  %v4108_v0 = vld [vmem:[#allocation10_spill] sm:$0xff]  ;;  %v4109_v59 = vld [vmem:[#allocation17_spill] sm:$0xff] }
 0x613   : > { %1885 = vmatpush1.msra.mxu0 %v3226_v58  ;;  %1956 = vmatpush1.msra.mxu1 %v3231_v60  ;;  %v4110_v58 = vld [vmem:[#allocation11_spill] sm:$0xff] }
 0x614   : > { %1886 = vmatprep.subr.mxu0 %v3238_v47  ;;  %1957 = vmatprep.subr.mxu1 %v3243_v54  ;;  %v4111_v60 = vld [vmem:[#allocation19_spill] sm:$0xff]  ;;  %v4112_v47 = vld [vmem:[#allocation12_spill] sm:$0xff]  ;;  %v4113_v54 = vld [vmem:[#allocation21_spill] sm:$0xff] }
 0x615   : > { %1887 = vmatpush1.msra.mxu0 %v3250_v56  ;;  %1958 = vmatpush1.msra.mxu1 %v3255_v2  ;;  %v4114_v56 = vld [vmem:[#allocation13_spill] sm:$0xff]  ;;  %v4115_v2 = vld [vmem:[#allocation22_spill] sm:$0xff] }
 0x616   : > { %1888 = vmatprep.subr.mxu0 %v3262_v3  ;;  %1959 = vmatprep.subr.mxu1 %v3267_v4  ;;  %v4116_v3 = vld [vmem:[#allocation14_spill] sm:$0xff]  ;;  %v4117_v4 = vld [vmem:[#allocation23_spill] sm:$0xff] }
 0x617   : > { %1889 = vmatpush1.msra.mxu0 %v3274_v6  ;;  %1960 = vmatpush1.msra.mxu1 %v3279_v7  ;;  %v4118_v6 = vld [vmem:[#allocation16_spill] sm:$0xff] }
 0x618   : > { %1890 = vmatprep.subr.mxu0 %v3286_v8  ;;  %1961 = vmatprep.subr.mxu1 %v3291_v9  ;;  %v4119_v7 = vld [vmem:[#allocation24_spill] sm:$0xff]  ;;  %v4120_v8 = vld [vmem:[#allocation18_spill] sm:$0xff]  ;;  %v4121_v9 = vld [vmem:[#allocation25_spill] sm:$0xff] }
 0x619   : > { %1891 = vmatpush1.msra.mxu0 %v3298_v11  ;;  %1962 = vmatpush1.msra.mxu1 %v3303_v12  ;;  %v4122_v11 = vld [vmem:[#allocation20_spill] sm:$0xff]  ;;  %v4123_v12 = vld [vmem:[#allocation26_spill] sm:$0xff] }
 0x61a   : > { %1892 = vmatprep.subr.mxu0 %v3310_v13  ;;  %1963 = vmatprep.subr.mxu1 %v3315_v14  ;;  %v4124_v13 = vld [vmem:[#allocation27_spill] sm:$0xff]  ;;  %v4125_v14 = vld [vmem:[#allocation28_spill] sm:$0xff] }
 0x61b   : > { %1893 = vmatpush1.msra.mxu0 %v3322_v15  ;;  %1964 = vmatpush1.msra.mxu1 %v3327_v16  ;;  %v4126_v15 = vmov 0.0   ;;  %v4127_v16 = vld [vmem:[#allocation29_spill] sm:$0xff] }
 0x61c   : > { %1894 = vmatprep.subr.mxu0 %v3334_v17  ;;  %1965 = vmatprep.subr.mxu1 %v3339_v18  ;;  %v4128_v17 = vld [vmem:[#allocation37_spill] sm:$0xff]  ;;  %v4129_v18 = vld [vmem:[#allocation34_spill] sm:$0xff] }
 0x61d   : > { %1895 = vmatpush1.msra.mxu0 %v3346_v19  ;;  %1966 = vmatpush1.msra.mxu1 %v3351_v20  ;;  %v1255_v19 = vadd.f32 %v4129_v18, %v4128_v17  ;;  %v1261_v42 = vadd.f32 %v4133_v37, %v4128_v17 }
 0x61e   : > { %1896 = vmatprep.subr.mxu0 %v3358_v21  ;;  %1967 = vmatprep.subr.mxu1 %v3363_v23  ;;  %v4130_v21 = vld [vmem:[#allocation36_spill] sm:$0xff] }
 0x61f   : > { %1897 = vmatpush1.msra.mxu0 %v3368_v24  ;;  %1968 = vmatpush1.msra.mxu1 %v3375_v25  ;;  %v1257_v23 = vadd.f32 %v4130_v21, %v4102_v49 }
 0x620   : > { %1898 = vmatprep.subr.mxu0 %v3380_v26  ;;  %1969 = vmatprep.subr.mxu1 %v3385_v27 }
 0x621   : > { %1899 = vmatpush1.msra.mxu0 %v3392_v28  ;;  %1970 = vmatpush1.msra.mxu1 %v3397_v29 }
 0x622   : > { %1900 = vmatprep.subr.mxu0 %v3402_v30  ;;  %1971 = vmatprep.subr.mxu1 %v3409_v31  ;;  %v4131_v31 = vld [vmem:[#allocation38_spill] sm:$0xff] }
 0x623   : > { %1901 = vmatpush1.msra.mxu0 %v3414_v32  ;;  %1972 = vmatpush1.msra.mxu1 %v3419_v33  ;;  %v1346_v32 = vadd.f32 %v4131_v31, %v3679_v38 }
 0x624   : > { %1902 = vmatprep.subr.mxu0 %v3426_v34  ;;  %1973 = vmatprep.subr.mxu1 %v3431_v35  ;;  %v4132_v34 = vld [vmem:[#allocation35_spill] sm:$0xff] }
 0x625   : > { %1903 = vmatpush1.msra.mxu0 %v3438_v36  ;;  %1974 = vmatpush1.msra.mxu1 %v4106_v5  ;;  %v1344_v35 = vadd.f32 %v4132_v34, %v3682_v48  ;;  %v4134_v5 = vld [vmem:[#allocation42_spill] sm:$0xff] }
 0x626   : > { %1904 = vmatprep.subr.mxu0 %v4107_v57  ;;  %1975 = vmatprep.subr.mxu1 %v4108_v0  ;;  %v1263_v57 = vadd.f32 %v4134_v5, %v4102_v49 }
 0x627   : > { %1905 = vmatpush1.msra.mxu0 %v4109_v59  ;;  %1976 = vmatpush1.msra.mxu1 %v4110_v58 }
 0x628   : > { %1906 = vmatprep.subr.mxu0 %v4111_v60  ;;  %1977 = vmatprep.subr.mxu1 %v4112_v47 }
 0x629   : > { %1907 = vmatpush1.msra.mxu0 %v4113_v54  ;;  %1978 = vmatpush1.msra.mxu1 %v4114_v56  ;;  %v4135_v56 = vld [vmem:[#allocation43_spill] sm:$0xff] }
 0x62a   : > { %1908 = vmatprep.subr.mxu0 %v4115_v2  ;;  %1979 = vmatprep.subr.mxu1 %v4116_v3  ;;  %v1352_v2 = vadd.f32 %v4135_v56, %v3679_v38 }
 0x62b   : > { %1909 = vmatpush1.msra.mxu0 %v4117_v4  ;;  %1980 = vmatpush1.msra.mxu1 %v4118_v6  ;;  %v4136_v4 = vld [vmem:[#allocation41_spill] sm:$0xff] }
 0x62c   : > { %1910 = vmatprep.subr.mxu0 %v4119_v7  ;;  %1981 = vmatprep.subr.mxu1 %v4120_v8  ;;  %v1350_v6 = vadd.f32 %v4136_v4, %v3682_v48 }
 0x62d   : > { %1911 = vmatpush1.msra.mxu0 %v4121_v9  ;;  %1982 = vmatpush1.msra.mxu1 %v4122_v11 }
 0x62e   : > { %1912 = vmatprep.subr.mxu0 %v4123_v12  ;;  %1983 = vmatprep.subr.mxu1 %v4124_v13 }
 0x62f   : > { %1913 = vmatpush1.msra.mxu0 %v4125_v14  ;;  %1946 = vmatprep.mubr.f32.mxu0 %v4126_v15 }
 0x630   : > { %1984 = vmatpush1.msra.mxu1 %v4127_v16  ;;  %2017 = vmatprep.mubr.f32.mxu1 %v4126_v15 }
 0x6d0   : > { %v1772_v20 = vpop.f32.mrf.mxu0  ;;  %v1843_v28 = vpop.f32.mrf.mxu1 }
 0x6d1   : > { %v1848_v24 = vadd.f32 %v1772_v20, %v1255_v19  ;;  %v1850_v36 = vadd.f32 %v1843_v28, %v1344_v35 }
 0x6d2   : > { %v1774_v25 = vpop.f32.mrf.mxu0  ;;  %v1845_v30 = vpop.f32.mrf.mxu1 }
 0x6d3   : > { %v2155_v26 = vmul.f32 -1.442695, %v1848_v24  ;;  %v1849_v27 = vadd.f32 %v1774_v25, %v1257_v23  ;;  %v1851_v33 = vadd.f32 %v1845_v30, %v1346_v32 }
 0x6d5   : > { %2272 = vpow2.f32 %v2155_v26  ;;  %v2156_v29 = vmul.f32 -1.442695, %v1849_v27  ;;  %v2157_v1 = vmul.f32 -1.442695, %v1851_v33 }
 0x6d7   : > { %2274 = vpow2.f32 %v2156_v29 }
 0x6d8   : > { %2276 = vtanh.f32 %v1850_v36 }
 0x6d9   : > { %2278 = vpow2.f32 %v2157_v1 }
 0x6e2   : > { %v2273_v61 = vpop.eup %2272 }
 0x6e3   : > { %v1856_v63 = vadd.f32 1.0, %v2273_v61 }
 0x6e4   : > { %v2275_v53 = vpop.eup %2274 }
 0x6e5   : > { %2280 = vrcp.f32 %v1856_v63  ;;  %v1862_v62 = vadd.f32 1.0, %v2275_v53  ;;  %v2277_v52 = vpop.eup %2276 }
 0x6e6   : > { %v2279_v40 = vpop.eup %2278 }
 0x6e7   : > { %2282 = vrcp.f32 %v1862_v62  ;;  %v1869_v39 = vadd.f32 1.0, %v2279_v40 }
 0x6e9   : > { %2284 = vrcp.f32 %v1869_v39 }
 0x6f2   : > { %v2281_v43 = vpop.eup %2280 }
 0x6f3   : > { %v1873_v10 = vmul.f32 %v2281_v43, %v2277_v52 }
 0x6f4   : > { %v2283_v51 = vpop.eup %2282 }
 0x6f5   : > { %v1872_v45 = vmul.f32 %v2283_v51, %v3764_v46 }
 0x6f6   : > { %v2285_v55 = vpop.eup %2284 }
 0x6f7   : > { %v1874_v22 = vadd.f32 %v1873_v10, %v1872_v45 }
 0x6f9   : > { %2286 = vtanh.f32 %v1874_v22 }
 0x706   : > { %v2287_v50 = vpop.eup %2286 }
 0x707   : > { %v1876_v41 = vmul.f32 %v2287_v50, %v2285_v55 }
 0x709   : > { %2158 = vst [vmem:[%s2360_s28 + $0x10] sm:$0xff] %v1876_v41  ;;  %1947 = vmatmul.mubr.f32.vlgmr.msra.gmra.mxu0 %v1876_v41  ;;  %2018 = vmatmul.mubr.f32.vlgmr.msra.gmra.mxu1 %v1876_v41 }
 0x7c9   : > { %v1948_v44 = vpop.f32.mrf.mxu0  ;;  %v2019_v60 = vpop.f32.mrf.mxu1 }
 0x7ca   : > { %v2024_v0 = vadd.f32 %v1948_v44, %v1261_v42  ;;  %v2026_v7 = vadd.f32 %v2019_v60, %v1350_v6 }
 0x7cb   : > { %v1950_v59 = vpop.f32.mrf.mxu0  ;;  %v2021_v54 = vpop.f32.mrf.mxu1 }
 0x7cc   : > { %v2159_v58 = vmul.f32 -1.442695, %v2024_v0  ;;  %v2025_v46 = vadd.f32 %v1950_v59, %v1263_v57  ;;  %v2027_v3 = vadd.f32 %v2021_v54, %v1352_v2 }
 0x7ce   : > { %2288 = vpow2.f32 %v2159_v58  ;;  %v2160_v47 = vmul.f32 -1.442695, %v2025_v46  ;;  %v2161_v8 = vmul.f32 -1.442695, %v2027_v3 }
 0x7d0   : > { %2290 = vpow2.f32 %v2160_v47 }
 0x7d1   : > { %2292 = vtanh.f32 %v2026_v7 }
 0x7d2   : > { %2294 = vpow2.f32 %v2161_v8 }
 0x7db   : > { %v2289_v9 = vpop.eup %2288 }
 0x7dc   : > { %v2032_v49 = vadd.f32 1.0, %v2289_v9 }
 0x7dd   : > { %v2291_v11 = vpop.eup %2290 }
 0x7de   : > { %2296 = vrcp.f32 %v2032_v49  ;;  %v2038_v12 = vadd.f32 1.0, %v2291_v11  ;;  %v2293_v13 = vpop.eup %2292 }
 0x7df   : > { %v2295_v14 = vpop.eup %2294 }
 0x7e0   : > { %2298 = vrcp.f32 %v2038_v12  ;;  %v2045_v17 = vadd.f32 1.0, %v2295_v14 }
 0x7e2   : > { %2300 = vrcp.f32 %v2045_v17 }
 0x7eb   : > { %v2297_v15 = vpop.eup %2296 }
 0x7ec   : > { %v2049_v16 = vmul.f32 %v2297_v15, %v2293_v13 }
 0x7ed   : > { %v2299_v38 = vpop.eup %2298 }
 0x7ee   : > { %v2048_v18 = vmul.f32 %v2299_v38, %v1874_v22 }
 0x7ef   : > { %v2301_v48 = vpop.eup %2300 }
 0x7f0   : > { %v2050_v19 = vadd.f32 %v2049_v16, %v2048_v18 }
 0x7f2   : > { %2302 = vtanh.f32 %v2050_v19  ;;  %2054 = vst [vmem:[#allocation5] sm:$0xff] %v2050_v19 }
 0x7ff   : > { %v2303_v20 = vpop.eup %2302 }
 0x800   : > { %v2052_v21 = vmul.f32 %v2303_v20, %v2301_v48 }
 0x802   : > { %2053 = vst [vmem:[#allocation4] sm:$0xff] %v2052_v21  ;;  %2162 = vst [vmem:[%s2360_s28 + $0x18] sm:$0xff] %v2052_v21 }
 0x803 PF: > { %s15_s18 = sadd.s32 1, %s2310_s18  }
 0x804   : > { %p12_p5 = scmp.ge.s32.totalorder %s15_s18, 4  }
 0x806   :  { %14 = sbr.rel (!%p12_p5) target bundleno = 1 (0x1), region = 80 }

</bundles_post_ra>
